<compile_context>
chip_gen: v7x
topology: tpu7x:2x2x1
jax: 0.10.0
libtpu: 0.0.40
codegen_flags: <defaults>
</compile_context>

<pallas_src>
import functools

import jax
import jax.numpy as jnp
from jax.experimental import pallas as pl
from jax.experimental.pallas import tpu as pltpu

LANE = 128  # TPU lane width; output channels are padded to a multiple of this.


def _round_up(x, m):
    return (x + m - 1) // m * m


# ----------------------------------------------------------------------------
# Pallas kernel: implicit-GEMM 3x3 stride-2 conv + folded-BN bias + ReLU for
# one image.
#   x_ref : [Hp, Wh, 2*Cin]        width-space-to-depth'd, zero-padded (bf16)
#   w_ref : [kh*n_off, 2*Cin, N]   per (kernel-row, column-offset) weight,
#                                  BN scale folded in, stride phases folded
#                                  into the 2*Cin axis (bf16)
#   b_ref : [1, N]                 folded BN bias (f32)
#   o_ref : [Ho, Wo, N]            output feature map (bf16, N lane-dense)
# ----------------------------------------------------------------------------
def _conv3x3s2_bn_relu_kernel(x_ref, w_ref, b_ref, o_ref, *,
                              ho, wo, kh, n_off, stride):
    bias = b_ref[...]                      # [1, N] f32
    nout = o_ref.shape[-1]
    for oh in range(ho):                   # static, unrolled
        acc = jnp.zeros((wo, nout), jnp.float32)
        for i in range(kh):                # kernel rows
            r = stride * oh + i            # input row index (static)
            for t in range(n_off):         # column-offset groups (stride 2)
                lhs = x_ref[r, pl.ds(t, wo), :]              # [Wo, 2*Cin] bf16
                acc = acc + jnp.dot(lhs, w_ref[i * n_off + t],
                                    preferred_element_type=jnp.float32)
        y = jnp.maximum(acc + bias, 0.0)                     # f32 epilogue
        o_ref[oh] = y.astype(o_ref.dtype)


# ----------------------------------------------------------------------------
# Wrapper: one conv3x3/s2 + BN + ReLU layer.
# ----------------------------------------------------------------------------
def conv3x3s2_bn_relu(x, w_cat, bias, *, kh=3, kw=3, stride=2, pad=1):
    """x: [B, H, W, Cin] bf16 -> [B, Ho, Wo, Nout] bf16 (Nout = padded Cout)."""
    assert stride == 2, "phase-folded weight layout assumes stride 2"
    B, H, W, C = x.shape
    n_off = (kw + 1) // 2                   # column-offset groups for stride 2
    Hp, Wp = H + 2 * pad, W + 2 * pad
    Ho = (Hp - kh) // stride + 1
    Wo = (Wp - kw) // stride + 1
    Wp_even = Wp + (Wp % 2)
    Wh = Wp_even // 2
    nout = w_cat.shape[-1]

    # Spatial zero-pad (plus one extra zero column if needed to make the padded
    # width even), then the free memory-order-preserving reshape that folds the
    # two stride-2 column phases into the channel (lane) axis.
    xp = jnp.pad(x, ((0, 0), (pad, pad), (pad, pad + (Wp_even - Wp)), (0, 0)))
    xs = xp.reshape(B, Hp, Wh, 2 * C)

    kernel = functools.partial(_conv3x3s2_bn_relu_kernel,
                               ho=Ho, wo=Wo, kh=kh, n_off=n_off, stride=stride)

    return pl.pallas_call(
        kernel,
        out_shape=jax.ShapeDtypeStruct((B, Ho, Wo, nout), jnp.bfloat16),
        grid_spec=pltpu.PrefetchScalarGridSpec(
            num_scalar_prefetch=0,
            grid=(B,),
            in_specs=[
                # full padded image per grid step (batch dim squeezed)
                pl.BlockSpec((None, Hp, Wh, 2 * C), lambda b: (b, 0, 0, 0)),
                # grid-invariant weight / bias blocks (stay VMEM-resident)
                pl.BlockSpec((kh * n_off, 2 * C, nout), lambda b: (0, 0, 0)),
                pl.BlockSpec((1, nout), lambda b: (0, 0)),
            ],
            out_specs=pl.BlockSpec((None, Ho, Wo, nout),
                                   lambda b: (b, 0, 0, 0)),
        ),
        compiler_params=pltpu.CompilerParams(
            dimension_semantics=("parallel",),   # >=2 -> both v7x TCs busy
        ),
    )(xs, w_cat, bias)


# ----------------------------------------------------------------------------
# Parameter construction (deterministic, in-script), with BN folding and the
# kernel's phase-folded weight layout precomputed once.
# ----------------------------------------------------------------------------
def make_conv_bn_params(key, cin, cout, *, cin_pad=None, kh=3, kw=3):
    cin_pad = cin if cin_pad is None else cin_pad
    cout_pad = _round_up(cout, LANE)
    n_off = (kw + 1) // 2
    kw_pad = 2 * n_off

    kw_, kg_, kbe_, km_, kv_ = jax.random.split(key, 5)
    w_oihw = jax.random.normal(kw_, (cout, cin, kh, kw), jnp.float32) * 0.1
    gamma = 1.0 + 0.1 * jax.random.normal(kg_, (cout,), jnp.float32)
    beta = 0.1 * jax.random.normal(kbe_, (cout,), jnp.float32)
    mean = 0.1 * jax.random.normal(km_, (cout,), jnp.float32)
    var = jnp.abs(jax.random.normal(kv_, (cout,), jnp.float32)) + 0.5
    eps = 1e-5
    scale = gamma / jnp.sqrt(var + eps)           # folded BN scale
    bias_raw = beta - mean * scale                # folded BN bias

    # Fold BN scale into the conv weight (constant fold, not a per-call op).
    w_fold = w_oihw * scale[:, None, None, None]          # [O, I, kh, kw]
    # Zero-pad: Cout -> lane-dense multiple of 128, Cin -> the (padded) channel
    # count this layer actually receives, kernel columns -> an even count so
    # each column-offset group holds both stride phases (phantom taps are 0).
    w_p = jnp.pad(w_fold, ((0, cout_pad - cout), (0, cin_pad - cin),
                           (0, 0), (0, kw_pad - kw)))
    # [O, I, kh, kw_pad] -> [kh, kw_pad, I, O] -> [kh*n_off, 2*I, O]
    w_cat = (jnp.transpose(w_p, (2, 3, 1, 0))
             .reshape(kh, n_off, 2, cin_pad, cout_pad)
             .reshape(kh * n_off, 2 * cin_pad, cout_pad)
             .astype(jnp.bfloat16))
    bias_p = jnp.pad(bias_raw, (0, cout_pad - cout)).reshape(1, cout_pad)

    return dict(w_cat=w_cat, bias=bias_p.astype(jnp.float32),
                w_fold=w_fold, bias_raw=bias_raw,
                cin=cin, cout=cout, cout_pad=cout_pad, kh=kh, kw=kw)


# ----------------------------------------------------------------------------
# Encoder forward:  x (NCHW) -> backbone features in NHWC
# (== features.permute(0, 2, 3, 1) of the PyTorch module).
# ----------------------------------------------------------------------------
def encoder_forward(x_nchw, layers):
    x = jnp.transpose(x_nchw, (0, 2, 3, 1)).astype(jnp.bfloat16)  # NCHW->NHWC
    for layer in layers:
        x = conv3x3s2_bn_relu(x, layer["w_cat"], layer["bias"],
                              kh=layer["kh"], kw=layer["kw"])
    # Channels stay zero-padded (lane-dense) between layers; strip the padding
    # and return f32 NHWC features.
    return x[..., :layers[-1]["cout"]].astype(jnp.float32)


# Pure-JAX reference (same bf16 operand rounding, f32 math) for validation.
def encoder_reference(x_nchw, layers):
    x = jnp.transpose(x_nchw, (0, 2, 3, 1)).astype(jnp.bfloat16)
    for layer in layers:
        w_hwio = (jnp.transpose(layer["w_fold"], (2, 3, 1, 0))
                  .astype(jnp.bfloat16).astype(jnp.float32))
        y = jax.lax.conv_general_dilated(
            x.astype(jnp.float32), w_hwio,
            window_strides=(2, 2), padding=((1, 1), (1, 1)),
            dimension_numbers=("NHWC", "HWIO", "NHWC"),
            precision=jax.lax.Precision.HIGHEST)
        y = jnp.maximum(y + layer["bias_raw"], 0.0)
        x = y.astype(jnp.bfloat16)        # match the kernel's inter-layer dtype
    return x.astype(jnp.float32)


if __name__ == "__main__":
    key = jax.random.PRNGKey(0)
    k_x, k_p1, k_p2 = jax.random.split(key, 3)

    # Small NCHW image batch, consistent with the module's expected input.
    x = jax.random.normal(k_x, (2, 3, 16, 16), jnp.float32)

    # Two-stage synthetic backbone: 3 -> 8 -> 16 channels, /2 spatial each.
    # Layer 2 consumes layer 1's lane-padded (128-channel) output, so its
    # weight is built over cin_pad=128 with zeros beyond the 8 real channels.
    p1 = make_conv_bn_params(k_p1, cin=3, cout=8, cin_pad=3)
    p2 = make_conv_bn_params(k_p2, cin=8, cout=16, cin_pad=p1["cout_pad"])
    layers = [p1, p2]

    feats = jax.block_until_ready(encoder_forward(x, layers))   # [2,4,4,16]
    ref = jax.block_until_ready(encoder_reference(x, layers))

    assert feats.shape == (2, 4, 4, 16), feats.shape
    assert bool(jnp.all(jnp.isfinite(feats)))
    err = float(jnp.max(jnp.abs(feats - ref)))
    assert err < 3e-2, f"max abs err vs reference conv+BN+ReLU: {err}"
    print("KERNEL_OK")
</pallas_src>

<mosaic_0001>
module attributes {stable_mosaic.version = 11 : i64} {
  func.func @_conv3x3s2_bn_relu_kernel(%arg0: i32, %arg1: memref<1x18x9x6xbf16, #tpu.memory_space<vmem>>, %arg2: memref<6x6x128xbf16, #tpu.memory_space<vmem>>, %arg3: memref<1x128xf32, #tpu.memory_space<vmem>>, %arg4: memref<1x8x8x128xbf16, #tpu.memory_space<vmem>>) attributes {dimension_semantics = [#tpu.dimension_semantics<parallel>], iteration_bounds = array<i64: 2>, scalar_prefetch = 0 : i64, scratch_operands = 0 : i64, tpu.core_type = #tpu.core_type<tc>, window_params = [{transform_indices = @transform_0, window_bounds = array<i64: 1, 18, 9, 6>}, {pipeline_mode = #tpu.pipeline_mode<synchronous>, transform_indices = @transform_1, window_bounds = array<i64: 6, 6, 128>}, {pipeline_mode = #tpu.pipeline_mode<synchronous>, transform_indices = @transform_2, window_bounds = array<i64: 1, 128>}, {transform_indices = @transform_3, window_bounds = array<i64: 1, 8, 8, 128>}]} {
    %c0 = arith.constant 0 : index
    %c0_0 = arith.constant 0 : index
    %0 = vector.load %arg3[%c0, %c0_0] : memref<1x128xf32, #tpu.memory_space<vmem>>, vector<1x128xf32>
    %cst = arith.constant 0.000000e+00 : f32
    %1 = vector.broadcast %cst : f32 to vector<8x128xf32>
    %c0_1 = arith.constant 0 : index
    %c0_2 = arith.constant 0 : index
    %c0_3 = arith.constant 0 : index
    %c0_4 = arith.constant 0 : index
    %2 = vector.load %arg1[%c0_1, %c0_2, %c0_3, %c0_4] : memref<1x18x9x6xbf16, #tpu.memory_space<vmem>>, vector<1x1x8x6xbf16>
    %3 = vector.shape_cast %2 : vector<1x1x8x6xbf16> to vector<8x6xbf16>
    %c0_5 = arith.constant 0 : index
    %c0_6 = arith.constant 0 : index
    %c0_7 = arith.constant 0 : index
    %4 = vector.load %arg2[%c0_5, %c0_6, %c0_7] : memref<6x6x128xbf16, #tpu.memory_space<vmem>>, vector<1x6x128xbf16>
    %5 = vector.shape_cast %4 : vector<1x6x128xbf16> to vector<6x128xbf16>
    %cst_8 = arith.constant dense<0.000000e+00> : vector<8x128xf32>
    %6 = tpu.matmul %3, %5, %cst_8 {dimension_numbers = #tpu.dot_dimension_numbers<[1], [0], [0], [1], [0, 0, 1, 1], [], []>} : vector<8x6xbf16>, vector<6x128xbf16>, vector<8x128xf32> -> vector<8x128xf32>
    %7 = arith.addf %1, %6 : vector<8x128xf32>
    %c0_9 = arith.constant 0 : index
    %c0_10 = arith.constant 0 : index
    %c1 = arith.constant 1 : index
    %c0_11 = arith.constant 0 : index
    %8 = vector.load %arg1[%c0_9, %c0_10, %c1, %c0_11] : memref<1x18x9x6xbf16, #tpu.memory_space<vmem>>, vector<1x1x8x6xbf16>
    %9 = vector.shape_cast %8 : vector<1x1x8x6xbf16> to vector<8x6xbf16>
    %c1_12 = arith.constant 1 : index
    %c0_13 = arith.constant 0 : index
    %c0_14 = arith.constant 0 : index
    %10 = vector.load %arg2[%c1_12, %c0_13, %c0_14] : memref<6x6x128xbf16, #tpu.memory_space<vmem>>, vector<1x6x128xbf16>
    %11 = vector.shape_cast %10 : vector<1x6x128xbf16> to vector<6x128xbf16>
    %cst_15 = arith.constant dense<0.000000e+00> : vector<8x128xf32>
    %12 = tpu.matmul %9, %11, %cst_15 {dimension_numbers = #tpu.dot_dimension_numbers<[1], [0], [0], [1], [0, 0, 1, 1], [], []>} : vector<8x6xbf16>, vector<6x128xbf16>, vector<8x128xf32> -> vector<8x128xf32>
    %13 = arith.addf %7, %12 : vector<8x128xf32>
    %c0_16 = arith.constant 0 : index
    %c1_17 = arith.constant 1 : index
    %c0_18 = arith.constant 0 : index
    %c0_19 = arith.constant 0 : index
    %14 = vector.load %arg1[%c0_16, %c1_17, %c0_18, %c0_19] : memref<1x18x9x6xbf16, #tpu.memory_space<vmem>>, vector<1x1x8x6xbf16>
    %15 = vector.shape_cast %14 : vector<1x1x8x6xbf16> to vector<8x6xbf16>
    %c2 = arith.constant 2 : index
    %c0_20 = arith.constant 0 : index
    %c0_21 = arith.constant 0 : index
    %16 = vector.load %arg2[%c2, %c0_20, %c0_21] : memref<6x6x128xbf16, #tpu.memory_space<vmem>>, vector<1x6x128xbf16>
    %17 = vector.shape_cast %16 : vector<1x6x128xbf16> to vector<6x128xbf16>
    %cst_22 = arith.constant dense<0.000000e+00> : vector<8x128xf32>
    %18 = tpu.matmul %15, %17, %cst_22 {dimension_numbers = #tpu.dot_dimension_numbers<[1], [0], [0], [1], [0, 0, 1, 1], [], []>} : vector<8x6xbf16>, vector<6x128xbf16>, vector<8x128xf32> -> vector<8x128xf32>
    %19 = arith.addf %13, %18 : vector<8x128xf32>
    %c0_23 = arith.constant 0 : index
    %c1_24 = arith.constant 1 : index
    %c1_25 = arith.constant 1 : index
    %c0_26 = arith.constant 0 : index
    %20 = vector.load %arg1[%c0_23, %c1_24, %c1_25, %c0_26] : memref<1x18x9x6xbf16, #tpu.memory_space<vmem>>, vector<1x1x8x6xbf16>
    %21 = vector.shape_cast %20 : vector<1x1x8x6xbf16> to vector<8x6xbf16>
    %c3 = arith.constant 3 : index
    %c0_27 = arith.constant 0 : index
    %c0_28 = arith.constant 0 : index
    %22 = vector.load %arg2[%c3, %c0_27, %c0_28] : memref<6x6x128xbf16, #tpu.memory_space<vmem>>, vector<1x6x128xbf16>
    %23 = vector.shape_cast %22 : vector<1x6x128xbf16> to vector<6x128xbf16>
    %cst_29 = arith.constant dense<0.000000e+00> : vector<8x128xf32>
    %24 = tpu.matmul %21, %23, %cst_29 {dimension_numbers = #tpu.dot_dimension_numbers<[1], [0], [0], [1], [0, 0, 1, 1], [], []>} : vector<8x6xbf16>, vector<6x128xbf16>, vector<8x128xf32> -> vector<8x128xf32>
    %25 = arith.addf %19, %24 : vector<8x128xf32>
    %c0_30 = arith.constant 0 : index
    %c2_31 = arith.constant 2 : index
    %c0_32 = arith.constant 0 : index
    %c0_33 = arith.constant 0 : index
    %26 = vector.load %arg1[%c0_30, %c2_31, %c0_32, %c0_33] : memref<1x18x9x6xbf16, #tpu.memory_space<vmem>>, vector<1x1x8x6xbf16>
    %27 = vector.shape_cast %26 : vector<1x1x8x6xbf16> to vector<8x6xbf16>
    %c4 = arith.constant 4 : index
    %c0_34 = arith.constant 0 : index
    %c0_35 = arith.constant 0 : index
    %28 = vector.load %arg2[%c4, %c0_34, %c0_35] : memref<6x6x128xbf16, #tpu.memory_space<vmem>>, vector<1x6x128xbf16>
    %29 = vector.shape_cast %28 : vector<1x6x128xbf16> to vector<6x128xbf16>
    %cst_36 = arith.constant dense<0.000000e+00> : vector<8x128xf32>
    %30 = tpu.matmul %27, %29, %cst_36 {dimension_numbers = #tpu.dot_dimension_numbers<[1], [0], [0], [1], [0, 0, 1, 1], [], []>} : vector<8x6xbf16>, vector<6x128xbf16>, vector<8x128xf32> -> vector<8x128xf32>
    %31 = arith.addf %25, %30 : vector<8x128xf32>
    %c0_37 = arith.constant 0 : index
    %c2_38 = arith.constant 2 : index
    %c1_39 = arith.constant 1 : index
    %c0_40 = arith.constant 0 : index
    %32 = vector.load %arg1[%c0_37, %c2_38, %c1_39, %c0_40] : memref<1x18x9x6xbf16, #tpu.memory_space<vmem>>, vector<1x1x8x6xbf16>
    %33 = vector.shape_cast %32 : vector<1x1x8x6xbf16> to vector<8x6xbf16>
    %c5 = arith.constant 5 : index
    %c0_41 = arith.constant 0 : index
    %c0_42 = arith.constant 0 : index
    %34 = vector.load %arg2[%c5, %c0_41, %c0_42] : memref<6x6x128xbf16, #tpu.memory_space<vmem>>, vector<1x6x128xbf16>
    %35 = vector.shape_cast %34 : vector<1x6x128xbf16> to vector<6x128xbf16>
    %cst_43 = arith.constant dense<0.000000e+00> : vector<8x128xf32>
    %36 = tpu.matmul %33, %35, %cst_43 {dimension_numbers = #tpu.dot_dimension_numbers<[1], [0], [0], [1], [0, 0, 1, 1], [], []>} : vector<8x6xbf16>, vector<6x128xbf16>, vector<8x128xf32> -> vector<8x128xf32>
    %37 = arith.addf %31, %36 : vector<8x128xf32>
    %38 = vector.broadcast %0 : vector<1x128xf32> to vector<8x128xf32>
    %39 = arith.addf %37, %38 : vector<8x128xf32>
    %cst_44 = arith.constant 0.000000e+00 : f32
    %40 = vector.broadcast %cst_44 : f32 to vector<8x128xf32>
    %41 = arith.maximumf %39, %40 : vector<8x128xf32>
    %42 = arith.truncf %41 : vector<8x128xf32> to vector<8x128xbf16>
    %c0_45 = arith.constant 0 : index
    %c0_46 = arith.constant 0 : index
    %c0_47 = arith.constant 0 : index
    %c0_48 = arith.constant 0 : index
    %43 = vector.load %arg4[%c0_45, %c0_46, %c0_47, %c0_48] : memref<1x8x8x128xbf16, #tpu.memory_space<vmem>>, vector<1x1x8x128xbf16>
    %44 = vector.shape_cast %43 : vector<1x1x8x128xbf16> to vector<8x128xbf16>
    %45 = vector.shape_cast %42 : vector<8x128xbf16> to vector<1x1x8x128xbf16>
    tpu.vector_store %arg4[%c0_45, %c0_46, %c0_47, %c0_48], %45 {strides = array<i32>} : memref<1x8x8x128xbf16, #tpu.memory_space<vmem>>, vector<1x1x8x128xbf16>,
    %cst_49 = arith.constant 0.000000e+00 : f32
    %46 = vector.broadcast %cst_49 : f32 to vector<8x128xf32>
    %c0_50 = arith.constant 0 : index
    %c2_51 = arith.constant 2 : index
    %c0_52 = arith.constant 0 : index
    %c0_53 = arith.constant 0 : index
    %47 = vector.load %arg1[%c0_50, %c2_51, %c0_52, %c0_53] : memref<1x18x9x6xbf16, #tpu.memory_space<vmem>>, vector<1x1x8x6xbf16>
    %48 = vector.shape_cast %47 : vector<1x1x8x6xbf16> to vector<8x6xbf16>
    %c0_54 = arith.constant 0 : index
    %c0_55 = arith.constant 0 : index
    %c0_56 = arith.constant 0 : index
    %49 = vector.load %arg2[%c0_54, %c0_55, %c0_56] : memref<6x6x128xbf16, #tpu.memory_space<vmem>>, vector<1x6x128xbf16>
    %50 = vector.shape_cast %49 : vector<1x6x128xbf16> to vector<6x128xbf16>
    %cst_57 = arith.constant dense<0.000000e+00> : vector<8x128xf32>
    %51 = tpu.matmul %48, %50, %cst_57 {dimension_numbers = #tpu.dot_dimension_numbers<[1], [0], [0], [1], [0, 0, 1, 1], [], []>} : vector<8x6xbf16>, vector<6x128xbf16>, vector<8x128xf32> -> vector<8x128xf32>
    %52 = arith.addf %46, %51 : vector<8x128xf32>
    %c0_58 = arith.constant 0 : index
    %c2_59 = arith.constant 2 : index
    %c1_60 = arith.constant 1 : index
    %c0_61 = arith.constant 0 : index
    %53 = vector.load %arg1[%c0_58, %c2_59, %c1_60, %c0_61] : memref<1x18x9x6xbf16, #tpu.memory_space<vmem>>, vector<1x1x8x6xbf16>
    %54 = vector.shape_cast %53 : vector<1x1x8x6xbf16> to vector<8x6xbf16>
    %c1_62 = arith.constant 1 : index
    %c0_63 = arith.constant 0 : index
    %c0_64 = arith.constant 0 : index
    %55 = vector.load %arg2[%c1_62, %c0_63, %c0_64] : memref<6x6x128xbf16, #tpu.memory_space<vmem>>, vector<1x6x128xbf16>
    %56 = vector.shape_cast %55 : vector<1x6x128xbf16> to vector<6x128xbf16>
    %cst_65 = arith.constant dense<0.000000e+00> : vector<8x128xf32>
    %57 = tpu.matmul %54, %56, %cst_65 {dimension_numbers = #tpu.dot_dimension_numbers<[1], [0], [0], [1], [0, 0, 1, 1], [], []>} : vector<8x6xbf16>, vector<6x128xbf16>, vector<8x128xf32> -> vector<8x128xf32>
    %58 = arith.addf %52, %57 : vector<8x128xf32>
    %c0_66 = arith.constant 0 : index
    %c3_67 = arith.constant 3 : index
    %c0_68 = arith.constant 0 : index
    %c0_69 = arith.constant 0 : index
    %59 = vector.load %arg1[%c0_66, %c3_67, %c0_68, %c0_69] : memref<1x18x9x6xbf16, #tpu.memory_space<vmem>>, vector<1x1x8x6xbf16>
    %60 = vector.shape_cast %59 : vector<1x1x8x6xbf16> to vector<8x6xbf16>
    %c2_70 = arith.constant 2 : index
    %c0_71 = arith.constant 0 : index
    %c0_72 = arith.constant 0 : index
    %61 = vector.load %arg2[%c2_70, %c0_71, %c0_72] : memref<6x6x128xbf16, #tpu.memory_space<vmem>>, vector<1x6x128xbf16>
    %62 = vector.shape_cast %61 : vector<1x6x128xbf16> to vector<6x128xbf16>
    %cst_73 = arith.constant dense<0.000000e+00> : vector<8x128xf32>
    %63 = tpu.matmul %60, %62, %cst_73 {dimension_numbers = #tpu.dot_dimension_numbers<[1], [0], [0], [1], [0, 0, 1, 1], [], []>} : vector<8x6xbf16>, vector<6x128xbf16>, vector<8x128xf32> -> vector<8x128xf32>
    %64 = arith.addf %58, %63 : vector<8x128xf32>
    %c0_74 = arith.constant 0 : index
    %c3_75 = arith.constant 3 : index
    %c1_76 = arith.constant 1 : index
    %c0_77 = arith.constant 0 : index
    %65 = vector.load %arg1[%c0_74, %c3_75, %c1_76, %c0_77] : memref<1x18x9x6xbf16, #tpu.memory_space<vmem>>, vector<1x1x8x6xbf16>
    %66 = vector.shape_cast %65 : vector<1x1x8x6xbf16> to vector<8x6xbf16>
    %c3_78 = arith.constant 3 : index
    %c0_79 = arith.constant 0 : index
    %c0_80 = arith.constant 0 : index
    %67 = vector.load %arg2[%c3_78, %c0_79, %c0_80] : memref<6x6x128xbf16, #tpu.memory_space<vmem>>, vector<1x6x128xbf16>
    %68 = vector.shape_cast %67 : vector<1x6x128xbf16> to vector<6x128xbf16>
    %cst_81 = arith.constant dense<0.000000e+00> : vector<8x128xf32>
    %69 = tpu.matmul %66, %68, %cst_81 {dimension_numbers = #tpu.dot_dimension_numbers<[1], [0], [0], [1], [0, 0, 1, 1], [], []>} : vector<8x6xbf16>, vector<6x128xbf16>, vector<8x128xf32> -> vector<8x128xf32>
    %70 = arith.addf %64, %69 : vector<8x128xf32>
    %c0_82 = arith.constant 0 : index
    %c4_83 = arith.constant 4 : index
    %c0_84 = arith.constant 0 : index
    %c0_85 = arith.constant 0 : index
    %71 = vector.load %arg1[%c0_82, %c4_83, %c0_84, %c0_85] : memref<1x18x9x6xbf16, #tpu.memory_space<vmem>>, vector<1x1x8x6xbf16>
    %72 = vector.shape_cast %71 : vector<1x1x8x6xbf16> to vector<8x6xbf16>
    %c4_86 = arith.constant 4 : index
    %c0_87 = arith.constant 0 : index
    %c0_88 = arith.constant 0 : index
    %73 = vector.load %arg2[%c4_86, %c0_87, %c0_88] : memref<6x6x128xbf16, #tpu.memory_space<vmem>>, vector<1x6x128xbf16>
    %74 = vector.shape_cast %73 : vector<1x6x128xbf16> to vector<6x128xbf16>
    %cst_89 = arith.constant dense<0.000000e+00> : vector<8x128xf32>
    %75 = tpu.matmul %72, %74, %cst_89 {dimension_numbers = #tpu.dot_dimension_numbers<[1], [0], [0], [1], [0, 0, 1, 1], [], []>} : vector<8x6xbf16>, vector<6x128xbf16>, vector<8x128xf32> -> vector<8x128xf32>
    %76 = arith.addf %70, %75 : vector<8x128xf32>
    %c0_90 = arith.constant 0 : index
    %c4_91 = arith.constant 4 : index
    %c1_92 = arith.constant 1 : index
    %c0_93 = arith.constant 0 : index
    %77 = vector.load %arg1[%c0_90, %c4_91, %c1_92, %c0_93] : memref<1x18x9x6xbf16, #tpu.memory_space<vmem>>, vector<1x1x8x6xbf16>
    %78 = vector.shape_cast %77 : vector<1x1x8x6xbf16> to vector<8x6xbf16>
    %c5_94 = arith.constant 5 : index
    %c0_95 = arith.constant 0 : index
    %c0_96 = arith.constant 0 : index
    %79 = vector.load %arg2[%c5_94, %c0_95, %c0_96] : memref<6x6x128xbf16, #tpu.memory_space<vmem>>, vector<1x6x128xbf16>
    %80 = vector.shape_cast %79 : vector<1x6x128xbf16> to vector<6x128xbf16>
    %cst_97 = arith.constant dense<0.000000e+00> : vector<8x128xf32>
    %81 = tpu.matmul %78, %80, %cst_97 {dimension_numbers = #tpu.dot_dimension_numbers<[1], [0], [0], [1], [0, 0, 1, 1], [], []>} : vector<8x6xbf16>, vector<6x128xbf16>, vector<8x128xf32> -> vector<8x128xf32>
    %82 = arith.addf %76, %81 : vector<8x128xf32>
    %83 = vector.broadcast %0 : vector<1x128xf32> to vector<8x128xf32>
    %84 = arith.addf %82, %83 : vector<8x128xf32>
    %cst_98 = arith.constant 0.000000e+00 : f32
    %85 = vector.broadcast %cst_98 : f32 to vector<8x128xf32>
    %86 = arith.maximumf %84, %85 : vector<8x128xf32>
    %87 = arith.truncf %86 : vector<8x128xf32> to vector<8x128xbf16>
    %c0_99 = arith.constant 0 : index
    %c1_100 = arith.constant 1 : index
    %c0_101 = arith.constant 0 : index
    %c0_102 = arith.constant 0 : index
    %88 = vector.load %arg4[%c0_99, %c1_100, %c0_101, %c0_102] : memref<1x8x8x128xbf16, #tpu.memory_space<vmem>>, vector<1x1x8x128xbf16>
    %89 = vector.shape_cast %88 : vector<1x1x8x128xbf16> to vector<8x128xbf16>
    %90 = vector.shape_cast %87 : vector<8x128xbf16> to vector<1x1x8x128xbf16>
    tpu.vector_store %arg4[%c0_99, %c1_100, %c0_101, %c0_102], %90 {strides = array<i32>} : memref<1x8x8x128xbf16, #tpu.memory_space<vmem>>, vector<1x1x8x128xbf16>,
    %cst_103 = arith.constant 0.000000e+00 : f32
    %91 = vector.broadcast %cst_103 : f32 to vector<8x128xf32>
    %c0_104 = arith.constant 0 : index
    %c4_105 = arith.constant 4 : index
    %c0_106 = arith.constant 0 : index
    %c0_107 = arith.constant 0 : index
    %92 = vector.load %arg1[%c0_104, %c4_105, %c0_106, %c0_107] : memref<1x18x9x6xbf16, #tpu.memory_space<vmem>>, vector<1x1x8x6xbf16>
    %93 = vector.shape_cast %92 : vector<1x1x8x6xbf16> to vector<8x6xbf16>
    %c0_108 = arith.constant 0 : index
    %c0_109 = arith.constant 0 : index
    %c0_110 = arith.constant 0 : index
    %94 = vector.load %arg2[%c0_108, %c0_109, %c0_110] : memref<6x6x128xbf16, #tpu.memory_space<vmem>>, vector<1x6x128xbf16>
    %95 = vector.shape_cast %94 : vector<1x6x128xbf16> to vector<6x128xbf16>
    %cst_111 = arith.constant dense<0.000000e+00> : vector<8x128xf32>
    %96 = tpu.matmul %93, %95, %cst_111 {dimension_numbers = #tpu.dot_dimension_numbers<[1], [0], [0], [1], [0, 0, 1, 1], [], []>} : vector<8x6xbf16>, vector<6x128xbf16>, vector<8x128xf32> -> vector<8x128xf32>
    %97 = arith.addf %91, %96 : vector<8x128xf32>
    %c0_112 = arith.constant 0 : index
    %c4_113 = arith.constant 4 : index
    %c1_114 = arith.constant 1 : index
    %c0_115 = arith.constant 0 : index
    %98 = vector.load %arg1[%c0_112, %c4_113, %c1_114, %c0_115] : memref<1x18x9x6xbf16, #tpu.memory_space<vmem>>, vector<1x1x8x6xbf16>
    %99 = vector.shape_cast %98 : vector<1x1x8x6xbf16> to vector<8x6xbf16>
    %c1_116 = arith.constant 1 : index
    %c0_117 = arith.constant 0 : index
    %c0_118 = arith.constant 0 : index
    %100 = vector.load %arg2[%c1_116, %c0_117, %c0_118] : memref<6x6x128xbf16, #tpu.memory_space<vmem>>, vector<1x6x128xbf16>
    %101 = vector.shape_cast %100 : vector<1x6x128xbf16> to vector<6x128xbf16>
    %cst_119 = arith.constant dense<0.000000e+00> : vector<8x128xf32>
    %102 = tpu.matmul %99, %101, %cst_119 {dimension_numbers = #tpu.dot_dimension_numbers<[1], [0], [0], [1], [0, 0, 1, 1], [], []>} : vector<8x6xbf16>, vector<6x128xbf16>, vector<8x128xf32> -> vector<8x128xf32>
    %103 = arith.addf %97, %102 : vector<8x128xf32>
    %c0_120 = arith.constant 0 : index
    %c5_121 = arith.constant 5 : index
    %c0_122 = arith.constant 0 : index
    %c0_123 = arith.constant 0 : index
    %104 = vector.load %arg1[%c0_120, %c5_121, %c0_122, %c0_123] : memref<1x18x9x6xbf16, #tpu.memory_space<vmem>>, vector<1x1x8x6xbf16>
    %105 = vector.shape_cast %104 : vector<1x1x8x6xbf16> to vector<8x6xbf16>
    %c2_124 = arith.constant 2 : index
    %c0_125 = arith.constant 0 : index
    %c0_126 = arith.constant 0 : index
    %106 = vector.load %arg2[%c2_124, %c0_125, %c0_126] : memref<6x6x128xbf16, #tpu.memory_space<vmem>>, vector<1x6x128xbf16>
    %107 = vector.shape_cast %106 : vector<1x6x128xbf16> to vector<6x128xbf16>
    %cst_127 = arith.constant dense<0.000000e+00> : vector<8x128xf32>
    %108 = tpu.matmul %105, %107, %cst_127 {dimension_numbers = #tpu.dot_dimension_numbers<[1], [0], [0], [1], [0, 0, 1, 1], [], []>} : vector<8x6xbf16>, vector<6x128xbf16>, vector<8x128xf32> -> vector<8x128xf32>
    %109 = arith.addf %103, %108 : vector<8x128xf32>
    %c0_128 = arith.constant 0 : index
    %c5_129 = arith.constant 5 : index
    %c1_130 = arith.constant 1 : index
    %c0_131 = arith.constant 0 : index
    %110 = vector.load %arg1[%c0_128, %c5_129, %c1_130, %c0_131] : memref<1x18x9x6xbf16, #tpu.memory_space<vmem>>, vector<1x1x8x6xbf16>
    %111 = vector.shape_cast %110 : vector<1x1x8x6xbf16> to vector<8x6xbf16>
    %c3_132 = arith.constant 3 : index
    %c0_133 = arith.constant 0 : index
    %c0_134 = arith.constant 0 : index
    %112 = vector.load %arg2[%c3_132, %c0_133, %c0_134] : memref<6x6x128xbf16, #tpu.memory_space<vmem>>, vector<1x6x128xbf16>
    %113 = vector.shape_cast %112 : vector<1x6x128xbf16> to vector<6x128xbf16>
    %cst_135 = arith.constant dense<0.000000e+00> : vector<8x128xf32>
    %114 = tpu.matmul %111, %113, %cst_135 {dimension_numbers = #tpu.dot_dimension_numbers<[1], [0], [0], [1], [0, 0, 1, 1], [], []>} : vector<8x6xbf16>, vector<6x128xbf16>, vector<8x128xf32> -> vector<8x128xf32>
    %115 = arith.addf %109, %114 : vector<8x128xf32>
    %c0_136 = arith.constant 0 : index
    %c6 = arith.constant 6 : index
    %c0_137 = arith.constant 0 : index
    %c0_138 = arith.constant 0 : index
    %116 = vector.load %arg1[%c0_136, %c6, %c0_137, %c0_138] : memref<1x18x9x6xbf16, #tpu.memory_space<vmem>>, vector<1x1x8x6xbf16>
    %117 = vector.shape_cast %116 : vector<1x1x8x6xbf16> to vector<8x6xbf16>
    %c4_139 = arith.constant 4 : index
    %c0_140 = arith.constant 0 : index
    %c0_141 = arith.constant 0 : index
    %118 = vector.load %arg2[%c4_139, %c0_140, %c0_141] : memref<6x6x128xbf16, #tpu.memory_space<vmem>>, vector<1x6x128xbf16>
    %119 = vector.shape_cast %118 : vector<1x6x128xbf16> to vector<6x128xbf16>
    %cst_142 = arith.constant dense<0.000000e+00> : vector<8x128xf32>
    %120 = tpu.matmul %117, %119, %cst_142 {dimension_numbers = #tpu.dot_dimension_numbers<[1], [0], [0], [1], [0, 0, 1, 1], [], []>} : vector<8x6xbf16>, vector<6x128xbf16>, vector<8x128xf32> -> vector<8x128xf32>
    %121 = arith.addf %115, %120 : vector<8x128xf32>
    %c0_143 = arith.constant 0 : index
    %c6_144 = arith.constant 6 : index
    %c1_145 = arith.constant 1 : index
    %c0_146 = arith.constant 0 : index
    %122 = vector.load %arg1[%c0_143, %c6_144, %c1_145, %c0_146] : memref<1x18x9x6xbf16, #tpu.memory_space<vmem>>, vector<1x1x8x6xbf16>
    %123 = vector.shape_cast %122 : vector<1x1x8x6xbf16> to vector<8x6xbf16>
    %c5_147 = arith.constant 5 : index
    %c0_148 = arith.constant 0 : index
    %c0_149 = arith.constant 0 : index
    %124 = vector.load %arg2[%c5_147, %c0_148, %c0_149] : memref<6x6x128xbf16, #tpu.memory_space<vmem>>, vector<1x6x128xbf16>
    %125 = vector.shape_cast %124 : vector<1x6x128xbf16> to vector<6x128xbf16>
    %cst_150 = arith.constant dense<0.000000e+00> : vector<8x128xf32>
    %126 = tpu.matmul %123, %125, %cst_150 {dimension_numbers = #tpu.dot_dimension_numbers<[1], [0], [0], [1], [0, 0, 1, 1], [], []>} : vector<8x6xbf16>, vector<6x128xbf16>, vector<8x128xf32> -> vector<8x128xf32>
    %127 = arith.addf %121, %126 : vector<8x128xf32>
    %128 = vector.broadcast %0 : vector<1x128xf32> to vector<8x128xf32>
    %129 = arith.addf %127, %128 : vector<8x128xf32>
    %cst_151 = arith.constant 0.000000e+00 : f32
    %130 = vector.broadcast %cst_151 : f32 to vector<8x128xf32>
    %131 = arith.maximumf %129, %130 : vector<8x128xf32>
    %132 = arith.truncf %131 : vector<8x128xf32> to vector<8x128xbf16>
    %c0_152 = arith.constant 0 : index
    %c2_153 = arith.constant 2 : index
    %c0_154 = arith.constant 0 : index
    %c0_155 = arith.constant 0 : index
    %133 = vector.load %arg4[%c0_152, %c2_153, %c0_154, %c0_155] : memref<1x8x8x128xbf16, #tpu.memory_space<vmem>>, vector<1x1x8x128xbf16>
    %134 = vector.shape_cast %133 : vector<1x1x8x128xbf16> to vector<8x128xbf16>
    %135 = vector.shape_cast %132 : vector<8x128xbf16> to vector<1x1x8x128xbf16>
    tpu.vector_store %arg4[%c0_152, %c2_153, %c0_154, %c0_155], %135 {strides = array<i32>} : memref<1x8x8x128xbf16, #tpu.memory_space<vmem>>, vector<1x1x8x128xbf16>,
    %cst_156 = arith.constant 0.000000e+00 : f32
    %136 = vector.broadcast %cst_156 : f32 to vector<8x128xf32>
    %c0_157 = arith.constant 0 : index
    %c6_158 = arith.constant 6 : index
    %c0_159 = arith.constant 0 : index
    %c0_160 = arith.constant 0 : index
    %137 = vector.load %arg1[%c0_157, %c6_158, %c0_159, %c0_160] : memref<1x18x9x6xbf16, #tpu.memory_space<vmem>>, vector<1x1x8x6xbf16>
    %138 = vector.shape_cast %137 : vector<1x1x8x6xbf16> to vector<8x6xbf16>
    %c0_161 = arith.constant 0 : index
    %c0_162 = arith.constant 0 : index
    %c0_163 = arith.constant 0 : index
    %139 = vector.load %arg2[%c0_161, %c0_162, %c0_163] : memref<6x6x128xbf16, #tpu.memory_space<vmem>>, vector<1x6x128xbf16>
    %140 = vector.shape_cast %139 : vector<1x6x128xbf16> to vector<6x128xbf16>
    %cst_164 = arith.constant dense<0.000000e+00> : vector<8x128xf32>
    %141 = tpu.matmul %138, %140, %cst_164 {dimension_numbers = #tpu.dot_dimension_numbers<[1], [0], [0], [1], [0, 0, 1, 1], [], []>} : vector<8x6xbf16>, vector<6x128xbf16>, vector<8x128xf32> -> vector<8x128xf32>
    %142 = arith.addf %136, %141 : vector<8x128xf32>
    %c0_165 = arith.constant 0 : index
    %c6_166 = arith.constant 6 : index
    %c1_167 = arith.constant 1 : index
    %c0_168 = arith.constant 0 : index
    %143 = vector.load %arg1[%c0_165, %c6_166, %c1_167, %c0_168] : memref<1x18x9x6xbf16, #tpu.memory_space<vmem>>, vector<1x1x8x6xbf16>
    %144 = vector.shape_cast %143 : vector<1x1x8x6xbf16> to vector<8x6xbf16>
    %c1_169 = arith.constant 1 : index
    %c0_170 = arith.constant 0 : index
    %c0_171 = arith.constant 0 : index
    %145 = vector.load %arg2[%c1_169, %c0_170, %c0_171] : memref<6x6x128xbf16, #tpu.memory_space<vmem>>, vector<1x6x128xbf16>
    %146 = vector.shape_cast %145 : vector<1x6x128xbf16> to vector<6x128xbf16>
    %cst_172 = arith.constant dense<0.000000e+00> : vector<8x128xf32>
    %147 = tpu.matmul %144, %146, %cst_172 {dimension_numbers = #tpu.dot_dimension_numbers<[1], [0], [0], [1], [0, 0, 1, 1], [], []>} : vector<8x6xbf16>, vector<6x128xbf16>, vector<8x128xf32> -> vector<8x128xf32>
    %148 = arith.addf %142, %147 : vector<8x128xf32>
    %c0_173 = arith.constant 0 : index
    %c7 = arith.constant 7 : index
    %c0_174 = arith.constant 0 : index
    %c0_175 = arith.constant 0 : index
    %149 = vector.load %arg1[%c0_173, %c7, %c0_174, %c0_175] : memref<1x18x9x6xbf16, #tpu.memory_space<vmem>>, vector<1x1x8x6xbf16>
    %150 = vector.shape_cast %149 : vector<1x1x8x6xbf16> to vector<8x6xbf16>
    %c2_176 = arith.constant 2 : index
    %c0_177 = arith.constant 0 : index
    %c0_178 = arith.constant 0 : index
    %151 = vector.load %arg2[%c2_176, %c0_177, %c0_178] : memref<6x6x128xbf16, #tpu.memory_space<vmem>>, vector<1x6x128xbf16>
    %152 = vector.shape_cast %151 : vector<1x6x128xbf16> to vector<6x128xbf16>
    %cst_179 = arith.constant dense<0.000000e+00> : vector<8x128xf32>
    %153 = tpu.matmul %150, %152, %cst_179 {dimension_numbers = #tpu.dot_dimension_numbers<[1], [0], [0], [1], [0, 0, 1, 1], [], []>} : vector<8x6xbf16>, vector<6x128xbf16>, vector<8x128xf32> -> vector<8x128xf32>
    %154 = arith.addf %148, %153 : vector<8x128xf32>
    %c0_180 = arith.constant 0 : index
    %c7_181 = arith.constant 7 : index
    %c1_182 = arith.constant 1 : index
    %c0_183 = arith.constant 0 : index
    %155 = vector.load %arg1[%c0_180, %c7_181, %c1_182, %c0_183] : memref<1x18x9x6xbf16, #tpu.memory_space<vmem>>, vector<1x1x8x6xbf16>
    %156 = vector.shape_cast %155 : vector<1x1x8x6xbf16> to vector<8x6xbf16>
    %c3_184 = arith.constant 3 : index
    %c0_185 = arith.constant 0 : index
    %c0_186 = arith.constant 0 : index
    %157 = vector.load %arg2[%c3_184, %c0_185, %c0_186] : memref<6x6x128xbf16, #tpu.memory_space<vmem>>, vector<1x6x128xbf16>
    %158 = vector.shape_cast %157 : vector<1x6x128xbf16> to vector<6x128xbf16>
    %cst_187 = arith.constant dense<0.000000e+00> : vector<8x128xf32>
    %159 = tpu.matmul %156, %158, %cst_187 {dimension_numbers = #tpu.dot_dimension_numbers<[1], [0], [0], [1], [0, 0, 1, 1], [], []>} : vector<8x6xbf16>, vector<6x128xbf16>, vector<8x128xf32> -> vector<8x128xf32>
    %160 = arith.addf %154, %159 : vector<8x128xf32>
    %c0_188 = arith.constant 0 : index
    %c8 = arith.constant 8 : index
    %c0_189 = arith.constant 0 : index
    %c0_190 = arith.constant 0 : index
    %161 = vector.load %arg1[%c0_188, %c8, %c0_189, %c0_190] : memref<1x18x9x6xbf16, #tpu.memory_space<vmem>>, vector<1x1x8x6xbf16>
    %162 = vector.shape_cast %161 : vector<1x1x8x6xbf16> to vector<8x6xbf16>
    %c4_191 = arith.constant 4 : index
    %c0_192 = arith.constant 0 : index
    %c0_193 = arith.constant 0 : index
    %163 = vector.load %arg2[%c4_191, %c0_192, %c0_193] : memref<6x6x128xbf16, #tpu.memory_space<vmem>>, vector<1x6x128xbf16>
    %164 = vector.shape_cast %163 : vector<1x6x128xbf16> to vector<6x128xbf16>
    %cst_194 = arith.constant dense<0.000000e+00> : vector<8x128xf32>
    %165 = tpu.matmul %162, %164, %cst_194 {dimension_numbers = #tpu.dot_dimension_numbers<[1], [0], [0], [1], [0, 0, 1, 1], [], []>} : vector<8x6xbf16>, vector<6x128xbf16>, vector<8x128xf32> -> vector<8x128xf32>
    %166 = arith.addf %160, %165 : vector<8x128xf32>
    %c0_195 = arith.constant 0 : index
    %c8_196 = arith.constant 8 : index
    %c1_197 = arith.constant 1 : index
    %c0_198 = arith.constant 0 : index
    %167 = vector.load %arg1[%c0_195, %c8_196, %c1_197, %c0_198] : memref<1x18x9x6xbf16, #tpu.memory_space<vmem>>, vector<1x1x8x6xbf16>
    %168 = vector.shape_cast %167 : vector<1x1x8x6xbf16> to vector<8x6xbf16>
    %c5_199 = arith.constant 5 : index
    %c0_200 = arith.constant 0 : index
    %c0_201 = arith.constant 0 : index
    %169 = vector.load %arg2[%c5_199, %c0_200, %c0_201] : memref<6x6x128xbf16, #tpu.memory_space<vmem>>, vector<1x6x128xbf16>
    %170 = vector.shape_cast %169 : vector<1x6x128xbf16> to vector<6x128xbf16>
    %cst_202 = arith.constant dense<0.000000e+00> : vector<8x128xf32>
    %171 = tpu.matmul %168, %170, %cst_202 {dimension_numbers = #tpu.dot_dimension_numbers<[1], [0], [0], [1], [0, 0, 1, 1], [], []>} : vector<8x6xbf16>, vector<6x128xbf16>, vector<8x128xf32> -> vector<8x128xf32>
    %172 = arith.addf %166, %171 : vector<8x128xf32>
    %173 = vector.broadcast %0 : vector<1x128xf32> to vector<8x128xf32>
    %174 = arith.addf %172, %173 : vector<8x128xf32>
    %cst_203 = arith.constant 0.000000e+00 : f32
    %175 = vector.broadcast %cst_203 : f32 to vector<8x128xf32>
    %176 = arith.maximumf %174, %175 : vector<8x128xf32>
    %177 = arith.truncf %176 : vector<8x128xf32> to vector<8x128xbf16>
    %c0_204 = arith.constant 0 : index
    %c3_205 = arith.constant 3 : index
    %c0_206 = arith.constant 0 : index
    %c0_207 = arith.constant 0 : index
    %178 = vector.load %arg4[%c0_204, %c3_205, %c0_206, %c0_207] : memref<1x8x8x128xbf16, #tpu.memory_space<vmem>>, vector<1x1x8x128xbf16>
    %179 = vector.shape_cast %178 : vector<1x1x8x128xbf16> to vector<8x128xbf16>
    %180 = vector.shape_cast %177 : vector<8x128xbf16> to vector<1x1x8x128xbf16>
    tpu.vector_store %arg4[%c0_204, %c3_205, %c0_206, %c0_207], %180 {strides = array<i32>} : memref<1x8x8x128xbf16, #tpu.memory_space<vmem>>, vector<1x1x8x128xbf16>,
    %cst_208 = arith.constant 0.000000e+00 : f32
    %181 = vector.broadcast %cst_208 : f32 to vector<8x128xf32>
    %c0_209 = arith.constant 0 : index
    %c8_210 = arith.constant 8 : index
    %c0_211 = arith.constant 0 : index
    %c0_212 = arith.constant 0 : index
    %182 = vector.load %arg1[%c0_209, %c8_210, %c0_211, %c0_212] : memref<1x18x9x6xbf16, #tpu.memory_space<vmem>>, vector<1x1x8x6xbf16>
    %183 = vector.shape_cast %182 : vector<1x1x8x6xbf16> to vector<8x6xbf16>
    %c0_213 = arith.constant 0 : index
    %c0_214 = arith.constant 0 : index
    %c0_215 = arith.constant 0 : index
    %184 = vector.load %arg2[%c0_213, %c0_214, %c0_215] : memref<6x6x128xbf16, #tpu.memory_space<vmem>>, vector<1x6x128xbf16>
    %185 = vector.shape_cast %184 : vector<1x6x128xbf16> to vector<6x128xbf16>
    %cst_216 = arith.constant dense<0.000000e+00> : vector<8x128xf32>
    %186 = tpu.matmul %183, %185, %cst_216 {dimension_numbers = #tpu.dot_dimension_numbers<[1], [0], [0], [1], [0, 0, 1, 1], [], []>} : vector<8x6xbf16>, vector<6x128xbf16>, vector<8x128xf32> -> vector<8x128xf32>
    %187 = arith.addf %181, %186 : vector<8x128xf32>
    %c0_217 = arith.constant 0 : index
    %c8_218 = arith.constant 8 : index
    %c1_219 = arith.constant 1 : index
    %c0_220 = arith.constant 0 : index
    %188 = vector.load %arg1[%c0_217, %c8_218, %c1_219, %c0_220] : memref<1x18x9x6xbf16, #tpu.memory_space<vmem>>, vector<1x1x8x6xbf16>
    %189 = vector.shape_cast %188 : vector<1x1x8x6xbf16> to vector<8x6xbf16>
    %c1_221 = arith.constant 1 : index
    %c0_222 = arith.constant 0 : index
    %c0_223 = arith.constant 0 : index
    %190 = vector.load %arg2[%c1_221, %c0_222, %c0_223] : memref<6x6x128xbf16, #tpu.memory_space<vmem>>, vector<1x6x128xbf16>
    %191 = vector.shape_cast %190 : vector<1x6x128xbf16> to vector<6x128xbf16>
    %cst_224 = arith.constant dense<0.000000e+00> : vector<8x128xf32>
    %192 = tpu.matmul %189, %191, %cst_224 {dimension_numbers = #tpu.dot_dimension_numbers<[1], [0], [0], [1], [0, 0, 1, 1], [], []>} : vector<8x6xbf16>, vector<6x128xbf16>, vector<8x128xf32> -> vector<8x128xf32>
    %193 = arith.addf %187, %192 : vector<8x128xf32>
    %c0_225 = arith.constant 0 : index
    %c9 = arith.constant 9 : index
    %c0_226 = arith.constant 0 : index
    %c0_227 = arith.constant 0 : index
    %194 = vector.load %arg1[%c0_225, %c9, %c0_226, %c0_227] : memref<1x18x9x6xbf16, #tpu.memory_space<vmem>>, vector<1x1x8x6xbf16>
    %195 = vector.shape_cast %194 : vector<1x1x8x6xbf16> to vector<8x6xbf16>
    %c2_228 = arith.constant 2 : index
    %c0_229 = arith.constant 0 : index
    %c0_230 = arith.constant 0 : index
    %196 = vector.load %arg2[%c2_228, %c0_229, %c0_230] : memref<6x6x128xbf16, #tpu.memory_space<vmem>>, vector<1x6x128xbf16>
    %197 = vector.shape_cast %196 : vector<1x6x128xbf16> to vector<6x128xbf16>
    %cst_231 = arith.constant dense<0.000000e+00> : vector<8x128xf32>
    %198 = tpu.matmul %195, %197, %cst_231 {dimension_numbers = #tpu.dot_dimension_numbers<[1], [0], [0], [1], [0, 0, 1, 1], [], []>} : vector<8x6xbf16>, vector<6x128xbf16>, vector<8x128xf32> -> vector<8x128xf32>
    %199 = arith.addf %193, %198 : vector<8x128xf32>
    %c0_232 = arith.constant 0 : index
    %c9_233 = arith.constant 9 : index
    %c1_234 = arith.constant 1 : index
    %c0_235 = arith.constant 0 : index
    %200 = vector.load %arg1[%c0_232, %c9_233, %c1_234, %c0_235] : memref<1x18x9x6xbf16, #tpu.memory_space<vmem>>, vector<1x1x8x6xbf16>
    %201 = vector.shape_cast %200 : vector<1x1x8x6xbf16> to vector<8x6xbf16>
    %c3_236 = arith.constant 3 : index
    %c0_237 = arith.constant 0 : index
    %c0_238 = arith.constant 0 : index
    %202 = vector.load %arg2[%c3_236, %c0_237, %c0_238] : memref<6x6x128xbf16, #tpu.memory_space<vmem>>, vector<1x6x128xbf16>
    %203 = vector.shape_cast %202 : vector<1x6x128xbf16> to vector<6x128xbf16>
    %cst_239 = arith.constant dense<0.000000e+00> : vector<8x128xf32>
    %204 = tpu.matmul %201, %203, %cst_239 {dimension_numbers = #tpu.dot_dimension_numbers<[1], [0], [0], [1], [0, 0, 1, 1], [], []>} : vector<8x6xbf16>, vector<6x128xbf16>, vector<8x128xf32> -> vector<8x128xf32>
    %205 = arith.addf %199, %204 : vector<8x128xf32>
    %c0_240 = arith.constant 0 : index
    %c10 = arith.constant 10 : index
    %c0_241 = arith.constant 0 : index
    %c0_242 = arith.constant 0 : index
    %206 = vector.load %arg1[%c0_240, %c10, %c0_241, %c0_242] : memref<1x18x9x6xbf16, #tpu.memory_space<vmem>>, vector<1x1x8x6xbf16>
    %207 = vector.shape_cast %206 : vector<1x1x8x6xbf16> to vector<8x6xbf16>
    %c4_243 = arith.constant 4 : index
    %c0_244 = arith.constant 0 : index
    %c0_245 = arith.constant 0 : index
    %208 = vector.load %arg2[%c4_243, %c0_244, %c0_245] : memref<6x6x128xbf16, #tpu.memory_space<vmem>>, vector<1x6x128xbf16>
    %209 = vector.shape_cast %208 : vector<1x6x128xbf16> to vector<6x128xbf16>
    %cst_246 = arith.constant dense<0.000000e+00> : vector<8x128xf32>
    %210 = tpu.matmul %207, %209, %cst_246 {dimension_numbers = #tpu.dot_dimension_numbers<[1], [0], [0], [1], [0, 0, 1, 1], [], []>} : vector<8x6xbf16>, vector<6x128xbf16>, vector<8x128xf32> -> vector<8x128xf32>
    %211 = arith.addf %205, %210 : vector<8x128xf32>
    %c0_247 = arith.constant 0 : index
    %c10_248 = arith.constant 10 : index
    %c1_249 = arith.constant 1 : index
    %c0_250 = arith.constant 0 : index
    %212 = vector.load %arg1[%c0_247, %c10_248, %c1_249, %c0_250] : memref<1x18x9x6xbf16, #tpu.memory_space<vmem>>, vector<1x1x8x6xbf16>
    %213 = vector.shape_cast %212 : vector<1x1x8x6xbf16> to vector<8x6xbf16>
    %c5_251 = arith.constant 5 : index
    %c0_252 = arith.constant 0 : index
    %c0_253 = arith.constant 0 : index
    %214 = vector.load %arg2[%c5_251, %c0_252, %c0_253] : memref<6x6x128xbf16, #tpu.memory_space<vmem>>, vector<1x6x128xbf16>
    %215 = vector.shape_cast %214 : vector<1x6x128xbf16> to vector<6x128xbf16>
    %cst_254 = arith.constant dense<0.000000e+00> : vector<8x128xf32>
    %216 = tpu.matmul %213, %215, %cst_254 {dimension_numbers = #tpu.dot_dimension_numbers<[1], [0], [0], [1], [0, 0, 1, 1], [], []>} : vector<8x6xbf16>, vector<6x128xbf16>, vector<8x128xf32> -> vector<8x128xf32>
    %217 = arith.addf %211, %216 : vector<8x128xf32>
    %218 = vector.broadcast %0 : vector<1x128xf32> to vector<8x128xf32>
    %219 = arith.addf %217, %218 : vector<8x128xf32>
    %cst_255 = arith.constant 0.000000e+00 : f32
    %220 = vector.broadcast %cst_255 : f32 to vector<8x128xf32>
    %221 = arith.maximumf %219, %220 : vector<8x128xf32>
    %222 = arith.truncf %221 : vector<8x128xf32> to vector<8x128xbf16>
    %c0_256 = arith.constant 0 : index
    %c4_257 = arith.constant 4 : index
    %c0_258 = arith.constant 0 : index
    %c0_259 = arith.constant 0 : index
    %223 = vector.load %arg4[%c0_256, %c4_257, %c0_258, %c0_259] : memref<1x8x8x128xbf16, #tpu.memory_space<vmem>>, vector<1x1x8x128xbf16>
    %224 = vector.shape_cast %223 : vector<1x1x8x128xbf16> to vector<8x128xbf16>
    %225 = vector.shape_cast %222 : vector<8x128xbf16> to vector<1x1x8x128xbf16>
    tpu.vector_store %arg4[%c0_256, %c4_257, %c0_258, %c0_259], %225 {strides = array<i32>} : memref<1x8x8x128xbf16, #tpu.memory_space<vmem>>, vector<1x1x8x128xbf16>,
    %cst_260 = arith.constant 0.000000e+00 : f32
    %226 = vector.broadcast %cst_260 : f32 to vector<8x128xf32>
    %c0_261 = arith.constant 0 : index
    %c10_262 = arith.constant 10 : index
    %c0_263 = arith.constant 0 : index
    %c0_264 = arith.constant 0 : index
    %227 = vector.load %arg1[%c0_261, %c10_262, %c0_263, %c0_264] : memref<1x18x9x6xbf16, #tpu.memory_space<vmem>>, vector<1x1x8x6xbf16>
    %228 = vector.shape_cast %227 : vector<1x1x8x6xbf16> to vector<8x6xbf16>
    %c0_265 = arith.constant 0 : index
    %c0_266 = arith.constant 0 : index
    %c0_267 = arith.constant 0 : index
    %229 = vector.load %arg2[%c0_265, %c0_266, %c0_267] : memref<6x6x128xbf16, #tpu.memory_space<vmem>>, vector<1x6x128xbf16>
    %230 = vector.shape_cast %229 : vector<1x6x128xbf16> to vector<6x128xbf16>
    %cst_268 = arith.constant dense<0.000000e+00> : vector<8x128xf32>
    %231 = tpu.matmul %228, %230, %cst_268 {dimension_numbers = #tpu.dot_dimension_numbers<[1], [0], [0], [1], [0, 0, 1, 1], [], []>} : vector<8x6xbf16>, vector<6x128xbf16>, vector<8x128xf32> -> vector<8x128xf32>
    %232 = arith.addf %226, %231 : vector<8x128xf32>
    %c0_269 = arith.constant 0 : index
    %c10_270 = arith.constant 10 : index
    %c1_271 = arith.constant 1 : index
    %c0_272 = arith.constant 0 : index
    %233 = vector.load %arg1[%c0_269, %c10_270, %c1_271, %c0_272] : memref<1x18x9x6xbf16, #tpu.memory_space<vmem>>, vector<1x1x8x6xbf16>
    %234 = vector.shape_cast %233 : vector<1x1x8x6xbf16> to vector<8x6xbf16>
    %c1_273 = arith.constant 1 : index
    %c0_274 = arith.constant 0 : index
    %c0_275 = arith.constant 0 : index
    %235 = vector.load %arg2[%c1_273, %c0_274, %c0_275] : memref<6x6x128xbf16, #tpu.memory_space<vmem>>, vector<1x6x128xbf16>
    %236 = vector.shape_cast %235 : vector<1x6x128xbf16> to vector<6x128xbf16>
    %cst_276 = arith.constant dense<0.000000e+00> : vector<8x128xf32>
    %237 = tpu.matmul %234, %236, %cst_276 {dimension_numbers = #tpu.dot_dimension_numbers<[1], [0], [0], [1], [0, 0, 1, 1], [], []>} : vector<8x6xbf16>, vector<6x128xbf16>, vector<8x128xf32> -> vector<8x128xf32>
    %238 = arith.addf %232, %237 : vector<8x128xf32>
    %c0_277 = arith.constant 0 : index
    %c11 = arith.constant 11 : index
    %c0_278 = arith.constant 0 : index
    %c0_279 = arith.constant 0 : index
    %239 = vector.load %arg1[%c0_277, %c11, %c0_278, %c0_279] : memref<1x18x9x6xbf16, #tpu.memory_space<vmem>>, vector<1x1x8x6xbf16>
    %240 = vector.shape_cast %239 : vector<1x1x8x6xbf16> to vector<8x6xbf16>
    %c2_280 = arith.constant 2 : index
    %c0_281 = arith.constant 0 : index
    %c0_282 = arith.constant 0 : index
    %241 = vector.load %arg2[%c2_280, %c0_281, %c0_282] : memref<6x6x128xbf16, #tpu.memory_space<vmem>>, vector<1x6x128xbf16>
    %242 = vector.shape_cast %241 : vector<1x6x128xbf16> to vector<6x128xbf16>
    %cst_283 = arith.constant dense<0.000000e+00> : vector<8x128xf32>
    %243 = tpu.matmul %240, %242, %cst_283 {dimension_numbers = #tpu.dot_dimension_numbers<[1], [0], [0], [1], [0, 0, 1, 1], [], []>} : vector<8x6xbf16>, vector<6x128xbf16>, vector<8x128xf32> -> vector<8x128xf32>
    %244 = arith.addf %238, %243 : vector<8x128xf32>
    %c0_284 = arith.constant 0 : index
    %c11_285 = arith.constant 11 : index
    %c1_286 = arith.constant 1 : index
    %c0_287 = arith.constant 0 : index
    %245 = vector.load %arg1[%c0_284, %c11_285, %c1_286, %c0_287] : memref<1x18x9x6xbf16, #tpu.memory_space<vmem>>, vector<1x1x8x6xbf16>
    %246 = vector.shape_cast %245 : vector<1x1x8x6xbf16> to vector<8x6xbf16>
    %c3_288 = arith.constant 3 : index
    %c0_289 = arith.constant 0 : index
    %c0_290 = arith.constant 0 : index
    %247 = vector.load %arg2[%c3_288, %c0_289, %c0_290] : memref<6x6x128xbf16, #tpu.memory_space<vmem>>, vector<1x6x128xbf16>
    %248 = vector.shape_cast %247 : vector<1x6x128xbf16> to vector<6x128xbf16>
    %cst_291 = arith.constant dense<0.000000e+00> : vector<8x128xf32>
    %249 = tpu.matmul %246, %248, %cst_291 {dimension_numbers = #tpu.dot_dimension_numbers<[1], [0], [0], [1], [0, 0, 1, 1], [], []>} : vector<8x6xbf16>, vector<6x128xbf16>, vector<8x128xf32> -> vector<8x128xf32>
    %250 = arith.addf %244, %249 : vector<8x128xf32>
    %c0_292 = arith.constant 0 : index
    %c12 = arith.constant 12 : index
    %c0_293 = arith.constant 0 : index
    %c0_294 = arith.constant 0 : index
    %251 = vector.load %arg1[%c0_292, %c12, %c0_293, %c0_294] : memref<1x18x9x6xbf16, #tpu.memory_space<vmem>>, vector<1x1x8x6xbf16>
    %252 = vector.shape_cast %251 : vector<1x1x8x6xbf16> to vector<8x6xbf16>
    %c4_295 = arith.constant 4 : index
    %c0_296 = arith.constant 0 : index
    %c0_297 = arith.constant 0 : index
    %253 = vector.load %arg2[%c4_295, %c0_296, %c0_297] : memref<6x6x128xbf16, #tpu.memory_space<vmem>>, vector<1x6x128xbf16>
    %254 = vector.shape_cast %253 : vector<1x6x128xbf16> to vector<6x128xbf16>
    %cst_298 = arith.constant dense<0.000000e+00> : vector<8x128xf32>
    %255 = tpu.matmul %252, %254, %cst_298 {dimension_numbers = #tpu.dot_dimension_numbers<[1], [0], [0], [1], [0, 0, 1, 1], [], []>} : vector<8x6xbf16>, vector<6x128xbf16>, vector<8x128xf32> -> vector<8x128xf32>
    %256 = arith.addf %250, %255 : vector<8x128xf32>
    %c0_299 = arith.constant 0 : index
    %c12_300 = arith.constant 12 : index
    %c1_301 = arith.constant 1 : index
    %c0_302 = arith.constant 0 : index
    %257 = vector.load %arg1[%c0_299, %c12_300, %c1_301, %c0_302] : memref<1x18x9x6xbf16, #tpu.memory_space<vmem>>, vector<1x1x8x6xbf16>
    %258 = vector.shape_cast %257 : vector<1x1x8x6xbf16> to vector<8x6xbf16>
    %c5_303 = arith.constant 5 : index
    %c0_304 = arith.constant 0 : index
    %c0_305 = arith.constant 0 : index
    %259 = vector.load %arg2[%c5_303, %c0_304, %c0_305] : memref<6x6x128xbf16, #tpu.memory_space<vmem>>, vector<1x6x128xbf16>
    %260 = vector.shape_cast %259 : vector<1x6x128xbf16> to vector<6x128xbf16>
    %cst_306 = arith.constant dense<0.000000e+00> : vector<8x128xf32>
    %261 = tpu.matmul %258, %260, %cst_306 {dimension_numbers = #tpu.dot_dimension_numbers<[1], [0], [0], [1], [0, 0, 1, 1], [], []>} : vector<8x6xbf16>, vector<6x128xbf16>, vector<8x128xf32> -> vector<8x128xf32>
    %262 = arith.addf %256, %261 : vector<8x128xf32>
    %263 = vector.broadcast %0 : vector<1x128xf32> to vector<8x128xf32>
    %264 = arith.addf %262, %263 : vector<8x128xf32>
    %cst_307 = arith.constant 0.000000e+00 : f32
    %265 = vector.broadcast %cst_307 : f32 to vector<8x128xf32>
    %266 = arith.maximumf %264, %265 : vector<8x128xf32>
    %267 = arith.truncf %266 : vector<8x128xf32> to vector<8x128xbf16>
    %c0_308 = arith.constant 0 : index
    %c5_309 = arith.constant 5 : index
    %c0_310 = arith.constant 0 : index
    %c0_311 = arith.constant 0 : index
    %268 = vector.load %arg4[%c0_308, %c5_309, %c0_310, %c0_311] : memref<1x8x8x128xbf16, #tpu.memory_space<vmem>>, vector<1x1x8x128xbf16>
    %269 = vector.shape_cast %268 : vector<1x1x8x128xbf16> to vector<8x128xbf16>
    %270 = vector.shape_cast %267 : vector<8x128xbf16> to vector<1x1x8x128xbf16>
    tpu.vector_store %arg4[%c0_308, %c5_309, %c0_310, %c0_311], %270 {strides = array<i32>} : memref<1x8x8x128xbf16, #tpu.memory_space<vmem>>, vector<1x1x8x128xbf16>,
    %cst_312 = arith.constant 0.000000e+00 : f32
    %271 = vector.broadcast %cst_312 : f32 to vector<8x128xf32>
    %c0_313 = arith.constant 0 : index
    %c12_314 = arith.constant 12 : index
    %c0_315 = arith.constant 0 : index
    %c0_316 = arith.constant 0 : index
    %272 = vector.load %arg1[%c0_313, %c12_314, %c0_315, %c0_316] : memref<1x18x9x6xbf16, #tpu.memory_space<vmem>>, vector<1x1x8x6xbf16>
    %273 = vector.shape_cast %272 : vector<1x1x8x6xbf16> to vector<8x6xbf16>
    %c0_317 = arith.constant 0 : index
    %c0_318 = arith.constant 0 : index
    %c0_319 = arith.constant 0 : index
    %274 = vector.load %arg2[%c0_317, %c0_318, %c0_319] : memref<6x6x128xbf16, #tpu.memory_space<vmem>>, vector<1x6x128xbf16>
    %275 = vector.shape_cast %274 : vector<1x6x128xbf16> to vector<6x128xbf16>
    %cst_320 = arith.constant dense<0.000000e+00> : vector<8x128xf32>
    %276 = tpu.matmul %273, %275, %cst_320 {dimension_numbers = #tpu.dot_dimension_numbers<[1], [0], [0], [1], [0, 0, 1, 1], [], []>} : vector<8x6xbf16>, vector<6x128xbf16>, vector<8x128xf32> -> vector<8x128xf32>
    %277 = arith.addf %271, %276 : vector<8x128xf32>
    %c0_321 = arith.constant 0 : index
    %c12_322 = arith.constant 12 : index
    %c1_323 = arith.constant 1 : index
    %c0_324 = arith.constant 0 : index
    %278 = vector.load %arg1[%c0_321, %c12_322, %c1_323, %c0_324] : memref<1x18x9x6xbf16, #tpu.memory_space<vmem>>, vector<1x1x8x6xbf16>
    %279 = vector.shape_cast %278 : vector<1x1x8x6xbf16> to vector<8x6xbf16>
    %c1_325 = arith.constant 1 : index
    %c0_326 = arith.constant 0 : index
    %c0_327 = arith.constant 0 : index
    %280 = vector.load %arg2[%c1_325, %c0_326, %c0_327] : memref<6x6x128xbf16, #tpu.memory_space<vmem>>, vector<1x6x128xbf16>
    %281 = vector.shape_cast %280 : vector<1x6x128xbf16> to vector<6x128xbf16>
    %cst_328 = arith.constant dense<0.000000e+00> : vector<8x128xf32>
    %282 = tpu.matmul %279, %281, %cst_328 {dimension_numbers = #tpu.dot_dimension_numbers<[1], [0], [0], [1], [0, 0, 1, 1], [], []>} : vector<8x6xbf16>, vector<6x128xbf16>, vector<8x128xf32> -> vector<8x128xf32>
    %283 = arith.addf %277, %282 : vector<8x128xf32>
    %c0_329 = arith.constant 0 : index
    %c13 = arith.constant 13 : index
    %c0_330 = arith.constant 0 : index
    %c0_331 = arith.constant 0 : index
    %284 = vector.load %arg1[%c0_329, %c13, %c0_330, %c0_331] : memref<1x18x9x6xbf16, #tpu.memory_space<vmem>>, vector<1x1x8x6xbf16>
    %285 = vector.shape_cast %284 : vector<1x1x8x6xbf16> to vector<8x6xbf16>
    %c2_332 = arith.constant 2 : index
    %c0_333 = arith.constant 0 : index
    %c0_334 = arith.constant 0 : index
    %286 = vector.load %arg2[%c2_332, %c0_333, %c0_334] : memref<6x6x128xbf16, #tpu.memory_space<vmem>>, vector<1x6x128xbf16>
    %287 = vector.shape_cast %286 : vector<1x6x128xbf16> to vector<6x128xbf16>
    %cst_335 = arith.constant dense<0.000000e+00> : vector<8x128xf32>
    %288 = tpu.matmul %285, %287, %cst_335 {dimension_numbers = #tpu.dot_dimension_numbers<[1], [0], [0], [1], [0, 0, 1, 1], [], []>} : vector<8x6xbf16>, vector<6x128xbf16>, vector<8x128xf32> -> vector<8x128xf32>
    %289 = arith.addf %283, %288 : vector<8x128xf32>
    %c0_336 = arith.constant 0 : index
    %c13_337 = arith.constant 13 : index
    %c1_338 = arith.constant 1 : index
    %c0_339 = arith.constant 0 : index
    %290 = vector.load %arg1[%c0_336, %c13_337, %c1_338, %c0_339] : memref<1x18x9x6xbf16, #tpu.memory_space<vmem>>, vector<1x1x8x6xbf16>
    %291 = vector.shape_cast %290 : vector<1x1x8x6xbf16> to vector<8x6xbf16>
    %c3_340 = arith.constant 3 : index
    %c0_341 = arith.constant 0 : index
    %c0_342 = arith.constant 0 : index
    %292 = vector.load %arg2[%c3_340, %c0_341, %c0_342] : memref<6x6x128xbf16, #tpu.memory_space<vmem>>, vector<1x6x128xbf16>
    %293 = vector.shape_cast %292 : vector<1x6x128xbf16> to vector<6x128xbf16>
    %cst_343 = arith.constant dense<0.000000e+00> : vector<8x128xf32>
    %294 = tpu.matmul %291, %293, %cst_343 {dimension_numbers = #tpu.dot_dimension_numbers<[1], [0], [0], [1], [0, 0, 1, 1], [], []>} : vector<8x6xbf16>, vector<6x128xbf16>, vector<8x128xf32> -> vector<8x128xf32>
    %295 = arith.addf %289, %294 : vector<8x128xf32>
    %c0_344 = arith.constant 0 : index
    %c14 = arith.constant 14 : index
    %c0_345 = arith.constant 0 : index
    %c0_346 = arith.constant 0 : index
    %296 = vector.load %arg1[%c0_344, %c14, %c0_345, %c0_346] : memref<1x18x9x6xbf16, #tpu.memory_space<vmem>>, vector<1x1x8x6xbf16>
    %297 = vector.shape_cast %296 : vector<1x1x8x6xbf16> to vector<8x6xbf16>
    %c4_347 = arith.constant 4 : index
    %c0_348 = arith.constant 0 : index
    %c0_349 = arith.constant 0 : index
    %298 = vector.load %arg2[%c4_347, %c0_348, %c0_349] : memref<6x6x128xbf16, #tpu.memory_space<vmem>>, vector<1x6x128xbf16>
    %299 = vector.shape_cast %298 : vector<1x6x128xbf16> to vector<6x128xbf16>
    %cst_350 = arith.constant dense<0.000000e+00> : vector<8x128xf32>
    %300 = tpu.matmul %297, %299, %cst_350 {dimension_numbers = #tpu.dot_dimension_numbers<[1], [0], [0], [1], [0, 0, 1, 1], [], []>} : vector<8x6xbf16>, vector<6x128xbf16>, vector<8x128xf32> -> vector<8x128xf32>
    %301 = arith.addf %295, %300 : vector<8x128xf32>
    %c0_351 = arith.constant 0 : index
    %c14_352 = arith.constant 14 : index
    %c1_353 = arith.constant 1 : index
    %c0_354 = arith.constant 0 : index
    %302 = vector.load %arg1[%c0_351, %c14_352, %c1_353, %c0_354] : memref<1x18x9x6xbf16, #tpu.memory_space<vmem>>, vector<1x1x8x6xbf16>
    %303 = vector.shape_cast %302 : vector<1x1x8x6xbf16> to vector<8x6xbf16>
    %c5_355 = arith.constant 5 : index
    %c0_356 = arith.constant 0 : index
    %c0_357 = arith.constant 0 : index
    %304 = vector.load %arg2[%c5_355, %c0_356, %c0_357] : memref<6x6x128xbf16, #tpu.memory_space<vmem>>, vector<1x6x128xbf16>
    %305 = vector.shape_cast %304 : vector<1x6x128xbf16> to vector<6x128xbf16>
    %cst_358 = arith.constant dense<0.000000e+00> : vector<8x128xf32>
    %306 = tpu.matmul %303, %305, %cst_358 {dimension_numbers = #tpu.dot_dimension_numbers<[1], [0], [0], [1], [0, 0, 1, 1], [], []>} : vector<8x6xbf16>, vector<6x128xbf16>, vector<8x128xf32> -> vector<8x128xf32>
    %307 = arith.addf %301, %306 : vector<8x128xf32>
    %308 = vector.broadcast %0 : vector<1x128xf32> to vector<8x128xf32>
    %309 = arith.addf %307, %308 : vector<8x128xf32>
    %cst_359 = arith.constant 0.000000e+00 : f32
    %310 = vector.broadcast %cst_359 : f32 to vector<8x128xf32>
    %311 = arith.maximumf %309, %310 : vector<8x128xf32>
    %312 = arith.truncf %311 : vector<8x128xf32> to vector<8x128xbf16>
    %c0_360 = arith.constant 0 : index
    %c6_361 = arith.constant 6 : index
    %c0_362 = arith.constant 0 : index
    %c0_363 = arith.constant 0 : index
    %313 = vector.load %arg4[%c0_360, %c6_361, %c0_362, %c0_363] : memref<1x8x8x128xbf16, #tpu.memory_space<vmem>>, vector<1x1x8x128xbf16>
    %314 = vector.shape_cast %313 : vector<1x1x8x128xbf16> to vector<8x128xbf16>
    %315 = vector.shape_cast %312 : vector<8x128xbf16> to vector<1x1x8x128xbf16>
    tpu.vector_store %arg4[%c0_360, %c6_361, %c0_362, %c0_363], %315 {strides = array<i32>} : memref<1x8x8x128xbf16, #tpu.memory_space<vmem>>, vector<1x1x8x128xbf16>,
    %cst_364 = arith.constant 0.000000e+00 : f32
    %316 = vector.broadcast %cst_364 : f32 to vector<8x128xf32>
    %c0_365 = arith.constant 0 : index
    %c14_366 = arith.constant 14 : index
    %c0_367 = arith.constant 0 : index
    %c0_368 = arith.constant 0 : index
    %317 = vector.load %arg1[%c0_365, %c14_366, %c0_367, %c0_368] : memref<1x18x9x6xbf16, #tpu.memory_space<vmem>>, vector<1x1x8x6xbf16>
    %318 = vector.shape_cast %317 : vector<1x1x8x6xbf16> to vector<8x6xbf16>
    %c0_369 = arith.constant 0 : index
    %c0_370 = arith.constant 0 : index
    %c0_371 = arith.constant 0 : index
    %319 = vector.load %arg2[%c0_369, %c0_370, %c0_371] : memref<6x6x128xbf16, #tpu.memory_space<vmem>>, vector<1x6x128xbf16>
    %320 = vector.shape_cast %319 : vector<1x6x128xbf16> to vector<6x128xbf16>
    %cst_372 = arith.constant dense<0.000000e+00> : vector<8x128xf32>
    %321 = tpu.matmul %318, %320, %cst_372 {dimension_numbers = #tpu.dot_dimension_numbers<[1], [0], [0], [1], [0, 0, 1, 1], [], []>} : vector<8x6xbf16>, vector<6x128xbf16>, vector<8x128xf32> -> vector<8x128xf32>
    %322 = arith.addf %316, %321 : vector<8x128xf32>
    %c0_373 = arith.constant 0 : index
    %c14_374 = arith.constant 14 : index
    %c1_375 = arith.constant 1 : index
    %c0_376 = arith.constant 0 : index
    %323 = vector.load %arg1[%c0_373, %c14_374, %c1_375, %c0_376] : memref<1x18x9x6xbf16, #tpu.memory_space<vmem>>, vector<1x1x8x6xbf16>
    %324 = vector.shape_cast %323 : vector<1x1x8x6xbf16> to vector<8x6xbf16>
    %c1_377 = arith.constant 1 : index
    %c0_378 = arith.constant 0 : index
    %c0_379 = arith.constant 0 : index
    %325 = vector.load %arg2[%c1_377, %c0_378, %c0_379] : memref<6x6x128xbf16, #tpu.memory_space<vmem>>, vector<1x6x128xbf16>
    %326 = vector.shape_cast %325 : vector<1x6x128xbf16> to vector<6x128xbf16>
    %cst_380 = arith.constant dense<0.000000e+00> : vector<8x128xf32>
    %327 = tpu.matmul %324, %326, %cst_380 {dimension_numbers = #tpu.dot_dimension_numbers<[1], [0], [0], [1], [0, 0, 1, 1], [], []>} : vector<8x6xbf16>, vector<6x128xbf16>, vector<8x128xf32> -> vector<8x128xf32>
    %328 = arith.addf %322, %327 : vector<8x128xf32>
    %c0_381 = arith.constant 0 : index
    %c15 = arith.constant 15 : index
    %c0_382 = arith.constant 0 : index
    %c0_383 = arith.constant 0 : index
    %329 = vector.load %arg1[%c0_381, %c15, %c0_382, %c0_383] : memref<1x18x9x6xbf16, #tpu.memory_space<vmem>>, vector<1x1x8x6xbf16>
    %330 = vector.shape_cast %329 : vector<1x1x8x6xbf16> to vector<8x6xbf16>
    %c2_384 = arith.constant 2 : index
    %c0_385 = arith.constant 0 : index
    %c0_386 = arith.constant 0 : index
    %331 = vector.load %arg2[%c2_384, %c0_385, %c0_386] : memref<6x6x128xbf16, #tpu.memory_space<vmem>>, vector<1x6x128xbf16>
    %332 = vector.shape_cast %331 : vector<1x6x128xbf16> to vector<6x128xbf16>
    %cst_387 = arith.constant dense<0.000000e+00> : vector<8x128xf32>
    %333 = tpu.matmul %330, %332, %cst_387 {dimension_numbers = #tpu.dot_dimension_numbers<[1], [0], [0], [1], [0, 0, 1, 1], [], []>} : vector<8x6xbf16>, vector<6x128xbf16>, vector<8x128xf32> -> vector<8x128xf32>
    %334 = arith.addf %328, %333 : vector<8x128xf32>
    %c0_388 = arith.constant 0 : index
    %c15_389 = arith.constant 15 : index
    %c1_390 = arith.constant 1 : index
    %c0_391 = arith.constant 0 : index
    %335 = vector.load %arg1[%c0_388, %c15_389, %c1_390, %c0_391] : memref<1x18x9x6xbf16, #tpu.memory_space<vmem>>, vector<1x1x8x6xbf16>
    %336 = vector.shape_cast %335 : vector<1x1x8x6xbf16> to vector<8x6xbf16>
    %c3_392 = arith.constant 3 : index
    %c0_393 = arith.constant 0 : index
    %c0_394 = arith.constant 0 : index
    %337 = vector.load %arg2[%c3_392, %c0_393, %c0_394] : memref<6x6x128xbf16, #tpu.memory_space<vmem>>, vector<1x6x128xbf16>
    %338 = vector.shape_cast %337 : vector<1x6x128xbf16> to vector<6x128xbf16>
    %cst_395 = arith.constant dense<0.000000e+00> : vector<8x128xf32>
    %339 = tpu.matmul %336, %338, %cst_395 {dimension_numbers = #tpu.dot_dimension_numbers<[1], [0], [0], [1], [0, 0, 1, 1], [], []>} : vector<8x6xbf16>, vector<6x128xbf16>, vector<8x128xf32> -> vector<8x128xf32>
    %340 = arith.addf %334, %339 : vector<8x128xf32>
    %c0_396 = arith.constant 0 : index
    %c16 = arith.constant 16 : index
    %c0_397 = arith.constant 0 : index
    %c0_398 = arith.constant 0 : index
    %341 = vector.load %arg1[%c0_396, %c16, %c0_397, %c0_398] : memref<1x18x9x6xbf16, #tpu.memory_space<vmem>>, vector<1x1x8x6xbf16>
    %342 = vector.shape_cast %341 : vector<1x1x8x6xbf16> to vector<8x6xbf16>
    %c4_399 = arith.constant 4 : index
    %c0_400 = arith.constant 0 : index
    %c0_401 = arith.constant 0 : index
    %343 = vector.load %arg2[%c4_399, %c0_400, %c0_401] : memref<6x6x128xbf16, #tpu.memory_space<vmem>>, vector<1x6x128xbf16>
    %344 = vector.shape_cast %343 : vector<1x6x128xbf16> to vector<6x128xbf16>
    %cst_402 = arith.constant dense<0.000000e+00> : vector<8x128xf32>
    %345 = tpu.matmul %342, %344, %cst_402 {dimension_numbers = #tpu.dot_dimension_numbers<[1], [0], [0], [1], [0, 0, 1, 1], [], []>} : vector<8x6xbf16>, vector<6x128xbf16>, vector<8x128xf32> -> vector<8x128xf32>
    %346 = arith.addf %340, %345 : vector<8x128xf32>
    %c0_403 = arith.constant 0 : index
    %c16_404 = arith.constant 16 : index
    %c1_405 = arith.constant 1 : index
    %c0_406 = arith.constant 0 : index
    %347 = vector.load %arg1[%c0_403, %c16_404, %c1_405, %c0_406] : memref<1x18x9x6xbf16, #tpu.memory_space<vmem>>, vector<1x1x8x6xbf16>
    %348 = vector.shape_cast %347 : vector<1x1x8x6xbf16> to vector<8x6xbf16>
    %c5_407 = arith.constant 5 : index
    %c0_408 = arith.constant 0 : index
    %c0_409 = arith.constant 0 : index
    %349 = vector.load %arg2[%c5_407, %c0_408, %c0_409] : memref<6x6x128xbf16, #tpu.memory_space<vmem>>, vector<1x6x128xbf16>
    %350 = vector.shape_cast %349 : vector<1x6x128xbf16> to vector<6x128xbf16>
    %cst_410 = arith.constant dense<0.000000e+00> : vector<8x128xf32>
    %351 = tpu.matmul %348, %350, %cst_410 {dimension_numbers = #tpu.dot_dimension_numbers<[1], [0], [0], [1], [0, 0, 1, 1], [], []>} : vector<8x6xbf16>, vector<6x128xbf16>, vector<8x128xf32> -> vector<8x128xf32>
    %352 = arith.addf %346, %351 : vector<8x128xf32>
    %353 = vector.broadcast %0 : vector<1x128xf32> to vector<8x128xf32>
    %354 = arith.addf %352, %353 : vector<8x128xf32>
    %cst_411 = arith.constant 0.000000e+00 : f32
    %355 = vector.broadcast %cst_411 : f32 to vector<8x128xf32>
    %356 = arith.maximumf %354, %355 : vector<8x128xf32>
    %357 = arith.truncf %356 : vector<8x128xf32> to vector<8x128xbf16>
    %c0_412 = arith.constant 0 : index
    %c7_413 = arith.constant 7 : index
    %c0_414 = arith.constant 0 : index
    %c0_415 = arith.constant 0 : index
    %358 = vector.load %arg4[%c0_412, %c7_413, %c0_414, %c0_415] : memref<1x8x8x128xbf16, #tpu.memory_space<vmem>>, vector<1x1x8x128xbf16>
    %359 = vector.shape_cast %358 : vector<1x1x8x128xbf16> to vector<8x128xbf16>
    %360 = vector.shape_cast %357 : vector<8x128xbf16> to vector<1x1x8x128xbf16>
    tpu.vector_store %arg4[%c0_412, %c7_413, %c0_414, %c0_415], %360 {strides = array<i32>} : memref<1x8x8x128xbf16, #tpu.memory_space<vmem>>, vector<1x1x8x128xbf16>,
    return
  }
  func.func @transform_0(%arg0: i32) -> (i32, i32, i32, i32) {
    %c0_i32 = arith.constant 0 : i32
    %c0_i32_0 = arith.constant 0 : i32
    %c0_i32_1 = arith.constant 0 : i32
    %c0_i32_2 = arith.constant 0 : i32
    return %arg0, %c0_i32, %c0_i32_0, %c0_i32_1 : i32, i32, i32, i32
  }
  func.func @transform_1(%arg0: i32) -> (i32, i32, i32) {
    %c0_i32 = arith.constant 0 : i32
    %c0_i32_0 = arith.constant 0 : i32
    %c0_i32_1 = arith.constant 0 : i32
    %c0_i32_2 = arith.constant 0 : i32
    return %c0_i32, %c0_i32_0, %c0_i32_1 : i32, i32, i32
  }
  func.func @transform_2(%arg0: i32) -> (i32, i32) {
    %c0_i32 = arith.constant 0 : i32
    %c0_i32_0 = arith.constant 0 : i32
    %c0_i32_1 = arith.constant 0 : i32
    return %c0_i32, %c0_i32_0 : i32, i32
  }
  func.func @transform_3(%arg0: i32) -> (i32, i32, i32, i32) {
    %c0_i32 = arith.constant 0 : i32
    %c0_i32_0 = arith.constant 0 : i32
    %c0_i32_1 = arith.constant 0 : i32
    %c0_i32_2 = arith.constant 0 : i32
    return %arg0, %c0_i32, %c0_i32_0, %c0_i32_1 : i32, i32, i32, i32
  }
}

</mosaic_0001>

<bundles_post_ra>
// kernel: tpu_custom_call.1
= control target key start
LH: loop header
LB: loop body
LE: loop exit
PB: predicated region body
PF: predicated region fallthrough
CT: control target
= control target key end

     0   :  { %8 = vsyncpa [#allocation3], 0  ;;  %s4255_s0 = inlined_call_operand.vmem [shape: bf16[2,18,9,6], index: 0, kind: input, shape index: {}]   ;;  %s4256_s1 = inlined_call_operand.vmem [shape: bf16[6,6,128], index: 1, kind: input, shape index: {}]   ;;  %s4257_s2 = inlined_call_operand.vmem [shape: f32[1,128], index: 2, kind: input, shape index: {}]   ;;  %s4258_s3 = inlined_call_operand.hbm [shape: bf16[2,8,8,128], index: 3, kind: output, shape index: {}]  }
   0x1   :  { %10 = vsyncpa [#allocation3 + $0x1], 0  ;;  %s3690_s12 = smov 0   ;;  %s3692_s13 = smov 0  }
   0x2   :  { %s3694_s14 = smov 0   ;;  %s3696_s15 = smov 0  }
   0x3 LB: > { %s3711_s16 = sadd.s32 4294967295, %s3663_s15   ;;  %s2955_s17 = sadd.s32 4294967294, %s3663_s15   ;;  %s3663_s15 = sphi %s3696_s15, %s4264_s15   ;;  %s3659_s14 = sphi %s3694_s14, %s4263_s14   ;;  %s3655_s13 = sphi %s3692_s13, %s4262_s13   ;;  %s3651_s12 = sphi %s3690_s12, %s4261_s12  }
   0x4   : > { %s3715_s18 = sadd.s32 1, %s3663_s15   ;;  %s91_s19 = sadd.s32 1, %s3659_s14 }
   0x5   : > { %s88_s20 = ssub.s32 %s3663_s15, %s3715_s18  ;;  %p101_p0 = scmp.ne.s32.totalorder %s3659_s14, %s3655_s13 }
   0x6   : > { %p89_p1 = scmp.eq.s32.totalorder %s88_s20, 0  ;;  %p102_p2 = scmp.eq.s32.totalorder %s3711_s16, 1 }
   0x7   : > { %p107_p3 = scmp.ne.s32.totalorder %s3655_s13, %s3651_s12  ;;  %p108_p4 = scmp.eq.s32.totalorder %s2955_s17, 1 }
   0x8   : > { %s3726_s21 = scalar_select %p89_p1, %s3659_s14, %s91_s19  }
   0x9   : > { %p3728_p5 = por %p102_p2, %p101_p0  ;;  %p3732_p6 = por %p108_p4, %p107_p3 }
   0xa   : > { %p2958_p7 = scmp.ge.s32.totalorder %s3663_s15, 1  ;;  %p140_p8 = scmp.lt.s32.totalorder %s3663_s15, 3 }
   0xc   : > { %p141_p9 = pnand %p2958_p7, %p140_p8 }
   0xd   : > { %v2961_v0 = vld [vmem:[%s4256_s1 + $0x4] sm:$0x7] (!%p141_p9)  ;;  %vm192_vm0 = vcmask (!%p141_p9), 1042432   ;;  %v172_v1 = vld [vmem:[%s4256_s1] sm:$0x7] (!%p141_p9)  ;;  %v3665_v2 = vmov (!%p141_p9), 0.0  }
   0xe   : > { %144 = sbr.rel (%p141_p9) target bundleno = 456 (0x1c8), region = 32  ;;  %3245 = vmatprep.subr.bf16.mxu0 (!%p141_p9), %v3665_v2  ;;  %3251 = vmatprep.subr.bf16.mxu1 (!%p141_p9), %v3665_v2  ;;  %v194_v3 = vsel (!%p141_p9), %vm192_vm0, %v2961_v0, 0  ;;  %v240_v4 = vsel (!%p141_p9), %vm192_vm0, %v172_v1, 0  ;;  %p164_p10 = scmp.lt.s32.totalorder (!%p141_p9), %s3711_s16, 1  ;;  %vm3666_vm1 = vmmov (!%p141_p9), 0   ;;  %vm188_vm2 = vcmask (!%p141_p9), 48128  }
   0xf   : > { %3246 = vmatpush3.bf16.msra.mxu0 (!%p141_p9), %v194_v3  ;;  %3252 = vmatpush3.bf16.msra.mxu1 (!%p141_p9), %v240_v4  ;;  %v2970_v5 = vld [vmem:[%s4256_s1 + $0xc] sm:$0x7] (!%p141_p9)  ;;  %v2966_v16 = vld [vmem:[%s4256_s1 + $0x8] sm:$0x7] (!%p141_p9)  ;;  %v2978_v17 = vld [vmem:[%s4256_s1 + $0x14] sm:$0x7] (!%p141_p9) }
  0x10   : > { %3253 = vmatprep.mubr.msk.bf16.mxu1 (!%p141_p9), %vm3666_vm1, %v3665_v2  ;;  %3247 = vmatprep.mubr.msk.bf16.mxu0 (!%p141_p9), %vm3666_vm1, %v3665_v2  ;;  %v353_v6 = vsel (!%p141_p9), %vm192_vm0, %v2970_v5, 0  ;;  %v290_v22 = vsel (!%p141_p9), %vm192_vm0, %v2966_v16, 0  ;;  %v467_v24 = vsel (!%p141_p9), %vm192_vm0, %v2978_v17, 0  ;;  %v2974_v27 = vld [vmem:[%s4256_s1 + $0x10] sm:$0x7] (!%p141_p9)  ;;  %s3148_s26 = sshll.u32 (!%p141_p9), %s3711_s16, 9 }
  0x11   : > { %3257 = vmatprep.subr.bf16.mxu0 (!%p141_p9), %v3665_v2  ;;  %3263 = vmatprep.subr.bf16.mxu1 (!%p141_p9), %v3665_v2  ;;  %v521_v30 = vld [vmem:[%s4256_s1] sm:$0x7] (!%p141_p9)  ;;  %v404_v33 = vsel (!%p141_p9), %vm192_vm0, %v2974_v27, 0  ;;  %v2984_v37 = vld [vmem:[%s4256_s1 + $0x4] sm:$0x7] (!%p141_p9)  ;;  %s4207_s30 = scalar_lea.hbm (!%p141_p9), %s4258_s3, %s3148_s26 }
  0x12   : > { %v586_v34 = vsel (!%p141_p9), %vm192_vm0, %v521_v30, 0  ;;  %v2993_v39 = vld [vmem:[%s4256_s1 + $0xc] sm:$0x7] (!%p141_p9)  ;;  %v540_v42 = vsel (!%p141_p9), %vm192_vm0, %v2984_v37, 0  ;;  %v2989_v49 = vld [vmem:[%s4256_s1 + $0x8] sm:$0x7] (!%p141_p9) }
  0x13   : > { %v697_v43 = vsel (!%p141_p9), %vm192_vm0, %v2993_v39, 0  ;;  %v3001_v50 = vld [vmem:[%s4256_s1 + $0x14] sm:$0x7] (!%p141_p9)  ;;  %v635_v54 = vsel (!%p141_p9), %vm192_vm0, %v2989_v49, 0  ;;  %v2997_v58 = vld [vmem:[%s4256_s1 + $0x10] sm:$0x7] (!%p141_p9) }
  0x14   : > { %v809_v55 = vsel (!%p141_p9), %vm192_vm0, %v3001_v50, 0  ;;  %v858_v59 = vld [vmem:[%s4256_s1] sm:$0x7] (!%p141_p9)  ;;  %v747_v0 = vsel (!%p141_p9), %vm192_vm0, %v2997_v58, 0  ;;  %v3007_v5 = vld [vmem:[%s4256_s1 + $0x4] sm:$0x7] (!%p141_p9) }
  0x15   : > { %s165_s28 = scalar_select %p164_p10, %s3711_s16, 1  ;;  %v923_v1 = vsel %vm192_vm0, %v858_v59, 0  ;;  %v3012_v17 = vld [vmem:[%s4256_s1 + $0x8] sm:$0x7]  ;;  %v1532_v59 = vld [vmem:[%s4256_s1] sm:$0x7] }
  0x16   : > { %s3667_s16 = smov [#allocation2]  }
  0x17   : > { %s3533_s4 = smul.u32 144, %s165_s28  ;;  %s3605_s6 = sshll.u32 %s3667_s16, 4  ;;  %s3606_s6 = int_to_ptr.vmem [resolvable:$false] %s3605_s6 }
  0x18   : > { %s3607_s8 = scalar_lea.vmem %s3606_s6, 1024 }
  0x19   : > { %s3762_s7 = scalar_lea.vmem %s4255_s0, %s3533_s4 }
  0x1a   : > { %v171_v7 = vld [vmem:[%s3762_s7] sm:$0xf]  ;;  %v173_v8 = vld [vmem:[%s3762_s7 + $0x4] sm:$0x1]  ;;  %v3578_v10 = vld [vmem:[%s3762_s7 + $0x8] sm:$0x1f]  }
  0x1b   : > { %v2962_v9 = vcombine.low %v171_v7, %v173_v8  ;;  %3254 = vmatmul.mubr.msk.bf16.vlgmr.msra.gmra.mrb[0].mxu1 %vm188_vm2, %v171_v7  ;;  %v3579_v11 = vld [vmem:[%s3762_s7 + $0x10] sm:$0x1f]   ;;  %v343_v14 = vshrl.u32 %v3578_v10, 16  ;;  %v345_v15 = vshll.u32 %v3578_v10, 16  ;;  %v2965_v28 = vld [vmem:[%s3762_s7 + $0x8] sm:$0xf] }
  0x1c   : > { %3264 = vmatpush3.bf16.msra.mxu1 %v353_v6  ;;  %3265 = vmatprep.mubr.msk.bf16.mxu1 %vm3666_vm1, %v3665_v2  ;;  %v459_v18 = vshll.u32 %v3579_v11, 16  ;;  %v457_v25 = vshrl.u32 %v3579_v11, 16  ;;  %v2982_v31 = vld [vmem:[%s3762_s7 + $0x10] sm:$0xf]  ;;  %v2983_v32 = vld [vmem:[%s3762_s7 + $0x14] sm:$0x1] }
  0x1d   : > { %v182_v12 = vshrl.u32 %v2962_v9, 16  ;;  %v184_v13 = vshll.u32 %v2962_v9, 16  ;;  %3275 = vmatprep.subr.bf16.mxu1 %v3665_v2  ;;  %v347_v20 = vrot.slane %v345_v15, 1  ;;  %v2985_v35 = vcombine.low %v2982_v31, %v2983_v32  ;;  %v3581_v36 = vld [vmem:[%s3762_s7 + $0x18] sm:$0x1f]  }
  0x1e   : > { %v461_v26 = vrot.slane %v459_v18, 1  ;;  %v689_v40 = vshll.u32 %v3581_v36, 16  ;;  %v2973_v41 = vld [vmem:[%s3762_s7 + $0x10] sm:$0xf]  ;;  %v687_v46 = vshrl.u32 %v3581_v36, 16  ;;  %v877_v10 = vsel %vm192_vm0, %v3007_v5, 0 }
  0x1f   : > { %v186_v19 = vrot.slane %v184_v13, 1  ;;  %v348_v23 = vor.u32 %v347_v20, %v343_v14  ;;  %v532_v38 = vshll.u32 %v2985_v35, 16  ;;  %v530_v44 = vshrl.u32 %v2985_v35, 16  ;;  %v3582_v48 = vld [vmem:[%s3762_s7 + $0x20] sm:$0x1f]  }
  0x20   : > { %v462_v29 = vor.u32 %v461_v26, %v457_v25  ;;  %v691_v47 = vrot.slane %v689_v40, 1  ;;  %v801_v53 = vshll.u32 %v3582_v48, 16  ;;  %v799_v56 = vshrl.u32 %v3582_v48, 16  ;;  %v3005_v61 = vld [vmem:[%s3762_s7 + $0x20] sm:$0xf] }
  0x21   : > { %v187_v21 = vor.u32 %v186_v19, %v182_v12  ;;  %v534_v45 = vrot.slane %v532_v38, 1  ;;  %v3006_v62 = vld [vmem:[%s3762_s7 + $0x24] sm:$0x1]  ;;  %v2988_v63 = vld [vmem:[%s3762_s7 + $0x18] sm:$0xf] }
  0x22   : > { %v692_v52 = vor.u32 %v691_v47, %v687_v46  ;;  %v803_v57 = vrot.slane %v801_v53, 1  ;;  %v3008_v3 = vcombine.low %v3005_v61, %v3006_v62  ;;  %v3584_v4 = vld [vmem:[%s3762_s7 + $0x28] sm:$0x1f]   ;;  %v2996_v9 = vld [vmem:[%s3762_s7 + $0x20] sm:$0xf] }
  0x23   : > { %3248 = vmatmul.mubr.msk.bf16.vlgmr.msra.gmra.mrb[0].mxu0 %vm188_vm2, %v187_v21  ;;  %3266 = vmatmul.mubr.msk.bf16.vlgmr.msra.gmra.mrb[4].mxu1 %vm188_vm2, %v348_v23  ;;  %v535_v51 = vor.u32 %v534_v45, %v530_v44  ;;  %v3016_v7 = vld [vmem:[%s4256_s1 + $0xc] sm:$0x7]  ;;  %v1026_v8 = vshll.u32 %v3584_v4, 16  ;;  %v1024_v14 = vshrl.u32 %v3584_v4, 16  ;;  %v3585_v16 = vld [vmem:[%s3762_s7 + $0x30] sm:$0x1f]  }
  0x24   : > { %3258 = vmatpush3.bf16.msra.mxu0 %v290_v22  ;;  %3259 = vmatprep.mubr.msk.bf16.mxu0 %vm3666_vm1, %v3665_v2  ;;  %v804_v60 = vor.u32 %v803_v57, %v799_v56  ;;  %v869_v6 = vshll.u32 %v3008_v3, 16  ;;  %v867_v11 = vshrl.u32 %v3008_v3, 16  ;;  %v1034_v13 = vsel %vm192_vm0, %v3016_v7, 0  ;;  %v3024_v20 = vld [vmem:[%s4256_s1 + $0x14] sm:$0x7] }
  0x25   : > { %3269 = vmatprep.subr.bf16.mxu0 %v3665_v2  ;;  %3276 = vmatpush3.bf16.msra.mxu1 %v467_v24  ;;  %v1028_v15 = vrot.slane %v1026_v8, 1  ;;  %v1138_v21 = vshll.u32 %v3585_v16, 16  ;;  %v972_v22 = vsel %vm192_vm0, %v3012_v17, 0  ;;  %v1146_v23 = vsel %vm192_vm0, %v3024_v20, 0  ;;  %v3020_v26 = vld [vmem:[%s4256_s1 + $0x10] sm:$0x7] }
  0x26   : > { %3277 = vmatprep.mubr.msk.bf16.mxu1 %vm3666_vm1, %v3665_v2  ;;  %3287 = vmatprep.subr.bf16.mxu1 %v3665_v2  ;;  %v871_v12 = vrot.slane %v869_v6, 1  ;;  %v1136_v24 = vshrl.u32 %v3585_v16, 16  ;;  %v3028_v30 = vld [vmem:[%s3762_s7 + $0x30] sm:$0xf]  ;;  %v1084_v32 = vsel %vm192_vm0, %v3020_v26, 0 }
  0x27   : > { %v1029_v19 = vor.u32 %v1028_v15, %v1024_v14  ;;  %v1140_v25 = vrot.slane %v1138_v21, 1  ;;  %v3587_v35 = vld [vmem:[%s3762_s7 + $0x38] sm:$0x1f]   ;;  %v3030_v36 = vld [vmem:[%s4256_s1 + $0x4] sm:$0x7] }
  0x28   : > { %v872_v18 = vor.u32 %v871_v12, %v867_v11  ;;  %v3039_v38 = vld [vmem:[%s4256_s1 + $0xc] sm:$0x7]  ;;  %v1363_v39 = vshll.u32 %v3587_v35, 16  ;;  %v3019_v40 = vld [vmem:[%s3762_s7 + $0x30] sm:$0xf]  ;;  %v1361_v45 = vshrl.u32 %v3587_v35, 16 }
  0x29   : > { %v1141_v27 = vor.u32 %v1140_v25, %v1136_v24  ;;  %v3588_v47 = vld [vmem:[%s3762_s7 + $0x40] sm:$0x1f]   ;;  %v3035_v48 = vld [vmem:[%s4256_s1 + $0x8] sm:$0x7]  ;;  %v3043_v57 = vld [vmem:[%s4256_s1 + $0x10] sm:$0x7] }
  0x2a   : > { %v1365_v46 = vrot.slane %v1363_v39, 1  ;;  %v1309_v53 = vsel %vm192_vm0, %v3035_v48, 0  ;;  %v3052_v62 = vld [vmem:[%s3762_s7 + $0x44] sm:$0x1]  ;;  %v3590_v3 = vld [vmem:[%s3762_s7 + $0x48] sm:$0x1f]  }
  0x2b   : > { %3260 = vmatmul.mubr.msk.bf16.vlgmr.msra.gmra.mrb[4].mxu0 %vm188_vm2, %v2965_v28  ;;  %3278 = vmatmul.mubr.msk.bf16.vlgmr.msra.gmra.mrb[8].mxu1 %vm188_vm2, %v462_v29  ;;  %v1195_v28 = vld [vmem:[%s4256_s1] sm:$0x7]  ;;  %v3011_v29 = vld [vmem:[%s3762_s7 + $0x28] sm:$0xf]  ;;  %v3053_v4 = vld [vmem:[%s4256_s1 + $0x4] sm:$0x7] }
  0x2c   : > { %3270 = vmatpush3.bf16.msra.mxu0 %v404_v33  ;;  %3271 = vmatprep.mubr.msk.bf16.mxu0 %vm3666_vm1, %v3665_v2  ;;  %v1260_v33 = vsel %vm192_vm0, %v1195_v28, 0  ;;  %v1366_v50 = vor.u32 %v1365_v46, %v1361_v45  ;;  %v3062_v6 = vld [vmem:[%s4256_s1 + $0xc] sm:$0x7]  ;;  %v1700_v7 = vshll.u32 %v3590_v3, 16  ;;  %v3042_v8 = vld [vmem:[%s3762_s7 + $0x40] sm:$0xf] }
  0x2d   : > { %3281 = vmatprep.subr.bf16.mxu0 %v3665_v2  ;;  %3288 = vmatpush3.bf16.msra.mxu1 %v586_v34  ;;  %v3591_v15 = vld [vmem:[%s3762_s7 + $0x50] sm:$0x1f]   ;;  %v3058_v16 = vld [vmem:[%s4256_s1 + $0x8] sm:$0x7]  ;;  %v3076_v35 = vld [vmem:[%s4256_s1 + $0x4] sm:$0x7] }
  0x2e   : > { %3289 = vmatprep.mubr.msk.bf16.mxu1 %vm3666_vm1, %v3665_v2  ;;  %3299 = vmatprep.subr.bf16.mxu1 %v3665_v2  ;;  %v1702_v14 = vrot.slane %v1700_v7, 1  ;;  %v1812_v20 = vshll.u32 %v3591_v15, 16  ;;  %v1646_v21 = vsel %vm192_vm0, %v3058_v16, 0  ;;  %v3066_v25 = vld [vmem:[%s4256_s1 + $0x10] sm:$0x7] }
  0x2f   : > { %v3057_v28 = vld [vmem:[%s3762_s7 + $0x48] sm:$0xf]  ;;  %v3065_v39 = vld [vmem:[%s3762_s7 + $0x50] sm:$0xf]  ;;  %v3594_v46 = vld [vmem:[%s3762_s7 + $0x60] sm:$0x1f]  }
  0x30   : > { %v1814_v24 = vrot.slane %v1812_v20, 1  ;;  %v3088_v7 = vld [vmem:[%s3762_s7 + $0x60] sm:$0xf] }
  0x33   : > { %3272 = vmatmul.mubr.msk.bf16.vlgmr.msra.gmra.mrb[8].mxu0 %vm188_vm2, %v2973_v41  ;;  %3290 = vmatmul.mubr.msk.bf16.vlgmr.msra.gmra.mrb[12].mxu1 %vm188_vm2, %v2982_v31  ;;  %v3029_v31 = vld [vmem:[%s3762_s7 + $0x34] sm:$0x1]  ;;  %v1214_v41 = vsel %vm192_vm0, %v3030_v36, 0 }
  0x34   : > { %3282 = vmatpush3.bf16.msra.mxu0 %v540_v42  ;;  %3283 = vmatprep.mubr.msk.bf16.mxu0 %vm3666_vm1, %v3665_v2  ;;  %v3031_v34 = vcombine.low %v3028_v30, %v3029_v31  ;;  %v1371_v42 = vsel %vm192_vm0, %v3039_v38, 0  ;;  %v1758_v31 = vsel %vm192_vm0, %v3066_v25, 0 }
  0x35   : > { %3293 = vmatprep.subr.bf16.mxu0 %v3665_v2  ;;  %3300 = vmatpush3.bf16.msra.mxu1 %v697_v43 }
  0x36   : > { %3301 = vmatprep.mubr.msk.bf16.mxu1 %vm3666_vm1, %v3665_v2  ;;  %3311 = vmatprep.subr.bf16.mxu1 %v3665_v2  ;;  %v1206_v37 = vshll.u32 %v3031_v34, 16  ;;  %v1204_v43 = vshrl.u32 %v3031_v34, 16  ;;  %v3593_v34 = vld [vmem:[%s3762_s7 + $0x58] sm:$0x1f]  }
  0x37   : > { %v2037_v38 = vshll.u32 %v3593_v34, 16 }
  0x38   : > { %v1208_v44 = vrot.slane %v1206_v37, 1  ;;  %v3085_v37 = vld [vmem:[%s4256_s1 + $0xc] sm:$0x7] }
  0x39   : > { %v2039_v45 = vrot.slane %v2037_v38, 1  ;;  %v3111_v38 = vld [vmem:[%s3762_s7 + $0x70] sm:$0xf] }
  0x3a   : > { %v1209_v49 = vor.u32 %v1208_v44, %v1204_v43  ;;  %v2035_v44 = vshrl.u32 %v3593_v34, 16  ;;  %v3122_v34 = vld [vmem:[%s4256_s1 + $0x4] sm:$0x7] }
  0x3b   : > { %3284 = vmatmul.mubr.msk.bf16.vlgmr.msra.gmra.mrb[12].mxu0 %vm188_vm2, %v535_v51  ;;  %3302 = vmatmul.mubr.msk.bf16.vlgmr.msra.gmra.mrb[16].mxu1 %vm188_vm2, %v692_v52  ;;  %v3047_v51 = vld [vmem:[%s4256_s1 + $0x14] sm:$0x7]  ;;  %v1475_v52 = vshll.u32 %v3588_v47, 16 }
  0x3c   : > { %3294 = vmatpush3.bf16.msra.mxu0 %v635_v54  ;;  %3295 = vmatprep.mubr.msk.bf16.mxu0 %vm3666_vm1, %v3665_v2  ;;  %v1483_v54 = vsel %vm192_vm0, %v3047_v51, 0  ;;  %v2149_v51 = vshll.u32 %v3594_v46, 16 }
  0x3d   : > { %3305 = vmatprep.subr.bf16.mxu0 %v3665_v2  ;;  %3312 = vmatpush3.bf16.msra.mxu1 %v809_v55  ;;  %v1473_v55 = vshrl.u32 %v3588_v47, 16  ;;  %v1477_v56 = vrot.slane %v1475_v52, 1  ;;  %v3081_v47 = vld [vmem:[%s4256_s1 + $0x8] sm:$0x7] }
  0x3e   : > { %3313 = vmatprep.mubr.msk.bf16.mxu1 %vm3666_vm1, %v3665_v2  ;;  %3323 = vmatprep.subr.bf16.mxu1 %v3665_v2  ;;  %v1983_v52 = vsel %vm192_vm0, %v3081_v47, 0 }
  0x3f   : > { %v1478_v58 = vor.u32 %v1477_v56, %v1473_v55  ;;  %v2151_v55 = vrot.slane %v2149_v51, 1  ;;  %v3089_v56 = vld [vmem:[%s4256_s1 + $0x10] sm:$0x7] }
  0x43   : > { %3296 = vmatmul.mubr.msk.bf16.vlgmr.msra.gmra.mrb[16].mxu0 %vm188_vm2, %v2988_v63  ;;  %3314 = vmatmul.mubr.msk.bf16.vlgmr.msra.gmra.mrb[20].mxu1 %vm188_vm2, %v804_v60  ;;  %v3034_v60 = vld [vmem:[%s3762_s7 + $0x38] sm:$0xf]  ;;  %v1421_v63 = vsel %vm192_vm0, %v3043_v57, 0 }
  0x44   : > { %3306 = vmatpush3.bf16.msra.mxu0 %v747_v0  ;;  %3307 = vmatprep.mubr.msk.bf16.mxu0 %vm3666_vm1, %v3665_v2  ;;  %v1597_v0 = vsel %vm192_vm0, %v1532_v59, 0  ;;  %v3080_v59 = vld [vmem:[%s3762_s7 + $0x58] sm:$0xf] }
  0x45   : > { %3317 = vmatprep.subr.bf16.mxu0 %v3665_v2  ;;  %3324 = vmatpush3.bf16.msra.mxu1 %v923_v1 }
  0x46   : > { %3325 = vmatprep.mubr.msk.bf16.mxu1 %vm3666_vm1, %v3665_v2  ;;  %3335 = vmatprep.subr.bf16.mxu1 %v3665_v2 }
  0x4b   : > { %3308 = vmatmul.mubr.msk.bf16.vlgmr.msra.gmra.mrb[20].mxu0 %vm188_vm2, %v2996_v9  ;;  %3326 = vmatmul.mubr.msk.bf16.vlgmr.msra.gmra.mrb[24].mxu1 %vm188_vm2, %v3005_v61  ;;  %v3051_v61 = vld [vmem:[%s3762_s7 + $0x40] sm:$0xf]  ;;  %v1551_v9 = vsel %vm192_vm0, %v3053_v4, 0 }
  0x4c   : > { %3318 = vmatpush3.bf16.msra.mxu0 %v877_v10  ;;  %3319 = vmatprep.mubr.msk.bf16.mxu0 %vm3666_vm1, %v3665_v2  ;;  %v3054_v1 = vcombine.low %v3051_v61, %v3052_v62  ;;  %v1708_v10 = vsel %vm192_vm0, %v3062_v6, 0  ;;  %v2095_v62 = vsel %vm192_vm0, %v3089_v56, 0 }
  0x4d   : > { %3329 = vmatprep.subr.bf16.mxu0 %v3665_v2  ;;  %3336 = vmatpush3.bf16.msra.mxu1 %v1034_v13  ;;  %v1698_v13 = vshrl.u32 %v3590_v3, 16  ;;  %v3099_v3 = vld [vmem:[%s4256_s1 + $0x4] sm:$0x7] }
  0x4e   : > { %3337 = vmatprep.mubr.msk.bf16.mxu1 %vm3666_vm1, %v3665_v2  ;;  %3347 = vmatprep.subr.bf16.mxu1 %v3665_v2  ;;  %v1543_v5 = vshll.u32 %v3054_v1, 16  ;;  %v1541_v11 = vshrl.u32 %v3054_v1, 16  ;;  %v3596_v1 = vld [vmem:[%s3762_s7 + $0x68] sm:$0x1f]  }
  0x4f   : > { %v2374_v6 = vshll.u32 %v3596_v1, 16 }
  0x50   : > { %v1545_v12 = vrot.slane %v1543_v5, 1  ;;  %v3108_v5 = vld [vmem:[%s4256_s1 + $0xc] sm:$0x7] }
  0x52   : > { %v1546_v17 = vor.u32 %v1545_v12, %v1541_v11  ;;  %v2372_v12 = vshrl.u32 %v3596_v1, 16 }
  0x53   : > { %3320 = vmatmul.mubr.msk.bf16.vlgmr.msra.gmra.mrb[24].mxu0 %vm188_vm2, %v872_v18  ;;  %3338 = vmatmul.mubr.msk.bf16.vlgmr.msra.gmra.mrb[28].mxu1 %vm188_vm2, %v1029_v19  ;;  %v1703_v18 = vor.u32 %v1702_v14, %v1698_v13  ;;  %v3070_v19 = vld [vmem:[%s4256_s1 + $0x14] sm:$0x7]  ;;  %v2376_v13 = vrot.slane %v2374_v6, 1 }
  0x54   : > { %3330 = vmatpush3.bf16.msra.mxu0 %v972_v22  ;;  %3331 = vmatprep.mubr.msk.bf16.mxu0 %vm3666_vm1, %v3665_v2  ;;  %v1820_v22 = vsel %vm192_vm0, %v3070_v19, 0  ;;  %v3597_v14 = vld [vmem:[%s3762_s7 + $0x70] sm:$0x1f]  }
  0x55   : > { %3341 = vmatprep.subr.bf16.mxu0 %v3665_v2  ;;  %3348 = vmatpush3.bf16.msra.mxu1 %v1146_v23  ;;  %v1810_v23 = vshrl.u32 %v3591_v15, 16  ;;  %v3104_v15 = vld [vmem:[%s4256_s1 + $0x8] sm:$0x7]  ;;  %v2486_v19 = vshll.u32 %v3597_v14, 16 }
  0x56   : > { %3349 = vmatprep.mubr.msk.bf16.mxu1 %vm3666_vm1, %v3665_v2  ;;  %3359 = vmatprep.subr.bf16.mxu1 %v3665_v2  ;;  %v2320_v20 = vsel %vm192_vm0, %v3104_v15, 0 }
  0x57   : > { %v1815_v26 = vor.u32 %v1814_v24, %v1810_v23  ;;  %v2488_v23 = vrot.slane %v2486_v19, 1  ;;  %v3112_v24 = vld [vmem:[%s4256_s1 + $0x10] sm:$0x7] }
  0x5b   : > { %3332 = vmatmul.mubr.msk.bf16.vlgmr.msra.gmra.mrb[28].mxu0 %vm188_vm2, %v3011_v29  ;;  %3350 = vmatmul.mubr.msk.bf16.vlgmr.msra.gmra.mrb[32].mxu1 %vm188_vm2, %v1141_v27  ;;  %v1869_v27 = vld [vmem:[%s4256_s1] sm:$0x7]  ;;  %v3074_v29 = vld [vmem:[%s3762_s7 + $0x50] sm:$0xf] }
  0x5c   : > { %3342 = vmatpush3.bf16.msra.mxu0 %v1084_v32  ;;  %3343 = vmatprep.mubr.msk.bf16.mxu0 %vm3666_vm1, %v3665_v2  ;;  %v1934_v32 = vsel %vm192_vm0, %v1869_v27, 0  ;;  %v3103_v27 = vld [vmem:[%s3762_s7 + $0x68] sm:$0xf] }
  0x5d   : > { %3353 = vmatprep.subr.bf16.mxu0 %v3665_v2  ;;  %3360 = vmatpush3.bf16.msra.mxu1 %v1260_v33 }
  0x5e   : > { %3361 = vmatprep.mubr.msk.bf16.mxu1 %vm3666_vm1, %v3665_v2  ;;  %3371 = vmatprep.subr.bf16.mxu1 %v3665_v2 }
  0x63   : > { %3344 = vmatmul.mubr.msk.bf16.vlgmr.msra.gmra.mrb[32].mxu0 %vm188_vm2, %v3019_v40  ;;  %3362 = vmatmul.mubr.msk.bf16.vlgmr.msra.gmra.mrb[36].mxu1 %vm188_vm2, %v3028_v30  ;;  %v3075_v30 = vld [vmem:[%s3762_s7 + $0x54] sm:$0x1]  ;;  %v1888_v40 = vsel %vm192_vm0, %v3076_v35, 0 }
  0x64   : > { %3354 = vmatpush3.bf16.msra.mxu0 %v1214_v41  ;;  %3355 = vmatprep.mubr.msk.bf16.mxu0 %vm3666_vm1, %v3665_v2  ;;  %v3077_v33 = vcombine.low %v3074_v29, %v3075_v30  ;;  %v2045_v41 = vsel %vm192_vm0, %v3085_v37, 0  ;;  %v2432_v30 = vsel %vm192_vm0, %v3112_v24, 0  ;;  %v4181_v24 = vld [vmem:[%s4257_s2] ss:$0 sm:$0xff] }
  0x65   : > { %3365 = vmatprep.subr.bf16.mxu0 %v3665_v2  ;;  %3372 = vmatpush3.bf16.msra.mxu1 %v1371_v42 }
  0x66   : > { %3373 = vmatprep.mubr.msk.bf16.mxu1 %vm3666_vm1, %v3665_v2  ;;  %3383 = vmatprep.subr.bf16.mxu1 %v3665_v2  ;;  %v1880_v36 = vshll.u32 %v3077_v33, 16  ;;  %v1878_v42 = vshrl.u32 %v3077_v33, 16  ;;  %v3599_v33 = vld [vmem:[%s3762_s7 + $0x78] sm:$0x1f]  }
  0x67   : > { %v2711_v37 = vshll.u32 %v3599_v33, 16 }
  0x68   : > { %v1882_v43 = vrot.slane %v1880_v36, 1  ;;  %v3131_v36 = vld [vmem:[%s4256_s1 + $0xc] sm:$0x7] }
  0x6a   : > { %v1883_v48 = vor.u32 %v1882_v43, %v1878_v42  ;;  %v2709_v43 = vshrl.u32 %v3599_v33, 16 }
  0x6b   : > { %3356 = vmatmul.mubr.msk.bf16.vlgmr.msra.gmra.mrb[36].mxu0 %vm188_vm2, %v1209_v49  ;;  %3374 = vmatmul.mubr.msk.bf16.vlgmr.msra.gmra.mrb[40].mxu1 %vm188_vm2, %v1366_v50  ;;  %v2040_v49 = vor.u32 %v2039_v45, %v2035_v44  ;;  %v3093_v50 = vld [vmem:[%s4256_s1 + $0x14] sm:$0x7]  ;;  %v2713_v44 = vrot.slane %v2711_v37, 1  ;;  %v3600_v45 = vld [vmem:[%s3762_s7 + $0x80] sm:$0x1f]  }
  0x6c   : > { %3366 = vmatpush3.bf16.msra.mxu0 %v1309_v53  ;;  %3367 = vmatprep.mubr.msk.bf16.mxu0 %vm3666_vm1, %v3665_v2  ;;  %v2157_v53 = vsel %vm192_vm0, %v3093_v50, 0  ;;  %v2823_v50 = vshll.u32 %v3600_v45, 16 }
  0x6d   : > { %3377 = vmatprep.subr.bf16.mxu0 %v3665_v2  ;;  %3384 = vmatpush3.bf16.msra.mxu1 %v1483_v54  ;;  %v2147_v54 = vshrl.u32 %v3594_v46, 16  ;;  %v3127_v46 = vld [vmem:[%s4256_s1 + $0x8] sm:$0x7] }
  0x6e   : > { %3385 = vmatprep.mubr.msk.bf16.mxu1 %vm3666_vm1, %v3665_v2  ;;  %3395 = vmatprep.subr.bf16.mxu1 %v3665_v2  ;;  %v2657_v51 = vsel %vm192_vm0, %v3127_v46, 0 }
  0x6f   : > { %v2152_v57 = vor.u32 %v2151_v55, %v2147_v54  ;;  %v2825_v54 = vrot.slane %v2823_v50, 1  ;;  %v3135_v55 = vld [vmem:[%s4256_s1 + $0x10] sm:$0x7] }
  0x73   : > { %3368 = vmatmul.mubr.msk.bf16.vlgmr.msra.gmra.mrb[40].mxu0 %vm188_vm2, %v3034_v60  ;;  %3386 = vmatmul.mubr.msk.bf16.vlgmr.msra.gmra.mrb[44].mxu1 %vm188_vm2, %v1478_v58  ;;  %v2206_v58 = vld [vmem:[%s4256_s1] sm:$0x7] }
  0x74   : > { %3378 = vmatpush3.bf16.msra.mxu0 %v1421_v63  ;;  %3379 = vmatprep.mubr.msk.bf16.mxu0 %vm3666_vm1, %v3665_v2  ;;  %v3097_v60 = vld [vmem:[%s3762_s7 + $0x60] sm:$0xf]  ;;  %v2271_v63 = vsel %vm192_vm0, %v2206_v58, 0  ;;  %v2769_v58 = vsel %vm192_vm0, %v3135_v55, 0 }
  0x75   : > { %3389 = vmatprep.subr.bf16.mxu0 %v3665_v2  ;;  %3396 = vmatpush3.bf16.msra.mxu1 %v1597_v0 }
  0x76   : > { %3397 = vmatprep.mubr.msk.bf16.mxu1 %vm3666_vm1, %v3665_v2  ;;  %3407 = vmatprep.subr.bf16.mxu1 %v3665_v2 }
  0x7b   : > { %3380 = vmatmul.mubr.msk.bf16.vlgmr.msra.gmra.mrb[44].mxu0 %vm188_vm2, %v3042_v8  ;;  %3398 = vmatmul.mubr.msk.bf16.vlgmr.msra.gmra.mrb[48].mxu1 %vm188_vm2, %v3051_v61  ;;  %v3098_v61 = vld [vmem:[%s3762_s7 + $0x64] sm:$0x1]  ;;  %v2225_v8 = vsel %vm192_vm0, %v3099_v3, 0 }
  0x7c   : > { %3390 = vmatpush3.bf16.msra.mxu0 %v1551_v9  ;;  %3391 = vmatprep.mubr.msk.bf16.mxu0 %vm3666_vm1, %v3665_v2  ;;  %v3100_v0 = vcombine.low %v3097_v60, %v3098_v61  ;;  %v2382_v9 = vsel %vm192_vm0, %v3108_v5, 0 }
  0x7d   : > { %3401 = vmatprep.subr.bf16.mxu0 %v3665_v2  ;;  %3408 = vmatpush3.bf16.msra.mxu1 %v1708_v10 }
  0x7e   : > { %3409 = vmatprep.mubr.msk.bf16.mxu1 %vm3666_vm1, %v3665_v2  ;;  %3419 = vmatprep.subr.bf16.mxu1 %v3665_v2  ;;  %v2217_v4 = vshll.u32 %v3100_v0, 16  ;;  %v2215_v10 = vshrl.u32 %v3100_v0, 16 }
  0x80   : > { %v2219_v11 = vrot.slane %v2217_v4, 1 }
  0x82   : > { %v2220_v16 = vor.u32 %v2219_v11, %v2215_v10 }
  0x83   : > { %3392 = vmatmul.mubr.msk.bf16.vlgmr.msra.gmra.mrb[48].mxu0 %vm188_vm2, %v1546_v17  ;;  %3410 = vmatmul.mubr.msk.bf16.vlgmr.msra.gmra.mrb[52].mxu1 %vm188_vm2, %v1703_v18  ;;  %v2377_v17 = vor.u32 %v2376_v13, %v2372_v12  ;;  %v3116_v18 = vld [vmem:[%s4256_s1 + $0x14] sm:$0x7] }
  0x84   : > { %3402 = vmatpush3.bf16.msra.mxu0 %v1646_v21  ;;  %3403 = vmatprep.mubr.msk.bf16.mxu0 %vm3666_vm1, %v3665_v2  ;;  %v2494_v21 = vsel %vm192_vm0, %v3116_v18, 0 }
  0x85   : > { %3413 = vmatprep.subr.bf16.mxu0 %v3665_v2  ;;  %3420 = vmatpush3.bf16.msra.mxu1 %v1820_v22  ;;  %v2484_v22 = vshrl.u32 %v3597_v14, 16 }
  0x86   : > { %3421 = vmatprep.mubr.msk.bf16.mxu1 %vm3666_vm1, %v3665_v2  ;;  %3431 = vmatprep.subr.bf16.mxu1 %v3665_v2 }
  0x87   : > { %v2489_v25 = vor.u32 %v2488_v23, %v2484_v22 }
  0x8b   : > { %3404 = vmatmul.mubr.msk.bf16.vlgmr.msra.gmra.mrb[52].mxu0 %vm188_vm2, %v3057_v28  ;;  %3422 = vmatmul.mubr.msk.bf16.vlgmr.msra.gmra.mrb[56].mxu1 %vm188_vm2, %v1815_v26  ;;  %v2543_v26 = vld [vmem:[%s4256_s1] sm:$0x7]  ;;  %v3120_v28 = vld [vmem:[%s3762_s7 + $0x70] sm:$0xf] }
  0x8c   : > { %3414 = vmatpush3.bf16.msra.mxu0 %v1758_v31  ;;  %3415 = vmatprep.mubr.msk.bf16.mxu0 %vm3666_vm1, %v3665_v2  ;;  %v2608_v31 = vsel %vm192_vm0, %v2543_v26, 0 }
  0x8d   : > { %3425 = vmatprep.subr.bf16.mxu0 %v3665_v2  ;;  %3432 = vmatpush3.bf16.msra.mxu1 %v1934_v32 }
  0x8e   : > { %3433 = vmatprep.mubr.msk.bf16.mxu1 %vm3666_vm1, %v3665_v2  ;;  %3443 = vmatprep.subr.bf16.mxu1 %v3665_v2 }
  0x93   : > { %3416 = vmatmul.mubr.msk.bf16.vlgmr.msra.gmra.mrb[56].mxu0 %vm188_vm2, %v3065_v39  ;;  %3434 = vmatmul.mubr.msk.bf16.vlgmr.msra.gmra.mrb[60].mxu1 %vm188_vm2, %v3074_v29  ;;  %v3121_v29 = vld [vmem:[%s3762_s7 + $0x74] sm:$0x1]  ;;  %v2562_v39 = vsel %vm192_vm0, %v3122_v34, 0 }
  0x94   : > { %3426 = vmatpush3.bf16.msra.mxu0 %v1888_v40  ;;  %3427 = vmatprep.mubr.msk.bf16.mxu0 %vm3666_vm1, %v3665_v2  ;;  %v3123_v32 = vcombine.low %v3120_v28, %v3121_v29  ;;  %v2719_v40 = vsel %vm192_vm0, %v3131_v36, 0 }
  0x95   : > { %3437 = vmatprep.subr.bf16.mxu0 %v3665_v2  ;;  %3444 = vmatpush3.bf16.msra.mxu1 %v2045_v41 }
  0x96   : > { %3445 = vmatprep.mubr.msk.bf16.mxu1 %vm3666_vm1, %v3665_v2  ;;  %3455 = vmatprep.subr.bf16.mxu1 %v3665_v2  ;;  %v2554_v35 = vshll.u32 %v3123_v32, 16  ;;  %v2552_v41 = vshrl.u32 %v3123_v32, 16 }
  0x98   : > { %v2556_v42 = vrot.slane %v2554_v35, 1 }
  0x9a   : > { %v2557_v47 = vor.u32 %v2556_v42, %v2552_v41 }
  0x9b   : > { %3428 = vmatmul.mubr.msk.bf16.vlgmr.msra.gmra.mrb[60].mxu0 %vm188_vm2, %v1883_v48  ;;  %3446 = vmatmul.mubr.msk.bf16.vlgmr.msra.gmra.mrb[64].mxu1 %vm188_vm2, %v2040_v49  ;;  %v2714_v48 = vor.u32 %v2713_v44, %v2709_v43  ;;  %v3139_v49 = vld [vmem:[%s4256_s1 + $0x14] sm:$0x7] }
  0x9c   : > { %3438 = vmatpush3.bf16.msra.mxu0 %v1983_v52  ;;  %3439 = vmatprep.mubr.msk.bf16.mxu0 %vm3666_vm1, %v3665_v2  ;;  %v2831_v52 = vsel %vm192_vm0, %v3139_v49, 0 }
  0x9d   : > { %3449 = vmatprep.subr.bf16.mxu0 %v3665_v2  ;;  %3456 = vmatpush3.bf16.msra.mxu1 %v2157_v53  ;;  %v2821_v53 = vshrl.u32 %v3600_v45, 16 }
  0x9e   : > { %3457 = vmatprep.mubr.msk.bf16.mxu1 %vm3666_vm1, %v3665_v2  ;;  %3467 = vmatprep.subr.bf16.mxu1 %v3665_v2 }
  0x9f   : > { %v2826_v56 = vor.u32 %v2825_v54, %v2821_v53 }
  0xa3   : > { %3440 = vmatmul.mubr.msk.bf16.vlgmr.msra.gmra.mrb[64].mxu0 %vm188_vm2, %v3080_v59  ;;  %3458 = vmatmul.mubr.msk.bf16.vlgmr.msra.gmra.mrb[68].mxu1 %vm188_vm2, %v2152_v57  ;;  %v3126_v57 = vld [vmem:[%s3762_s7 + $0x78] sm:$0xf]  ;;  %v3134_v59 = vld [vmem:[%s3762_s7 + $0x80] sm:$0xf]  ;;  %s161_s7 = sand.u32 1, %s3655_s13  }
  0xa4   : > { %3450 = vmatpush3.bf16.msra.mxu0 %v2095_v62  ;;  %3451 = vmatprep.mubr.msk.bf16.mxu0 %vm3666_vm1, %v3665_v2  ;;  %s2959_s24 = sshll.u32 %s161_s7, 5  ;;  %s4214_s4 = scalar_lea.sflag [#allocation3], %s161_s7 }
  0xa5   : > { %3461 = vmatprep.subr.bf16.mxu0 %v3665_v2  ;;  %3468 = vmatpush3.bf16.msra.mxu1 %v2271_v63  ;;  %s4186_s25 = scalar_lea.vmem [#allocation2], %s2959_s24 }
  0xa6   : > { %3469 = vmatprep.mubr.msk.bf16.mxu1 %vm3666_vm1, %v3665_v2  ;;  %3479 = vmatprep.subr.bf16.mxu1 %v3665_v2  ;;  %s2893_s27 = sshll.u32 %s4186_s25, 4  ;;  %s4209_s27 = int_to_ptr.vmem [resolvable:$true] %s2893_s27 }
  0xa7   : > { %s3601_s5 = scalar_lea.vmem %s4209_s27, 512  ;;  %p3608_p0 = scmp.lt.s32.totalorder %s4209_s27, %s3606_s6 }
  0xa8   : > { %p3602_p11 = scmp.ne.s32.totalorder %s4209_s27, %s3601_s5  ;;  %p3609_p1 = scmp.lt.s32.totalorder %s3607_s8, %s3601_s5 }
  0xaa   : > { %p3603_p12 = pnand %p3602_p11, %p3728_p5  ;;  %p3610_p2 = por %p3609_p1, %p3608_p0 }
  0xab   : > { %3452 = vmatmul.mubr.msk.bf16.vlgmr.msra.gmra.mrb[68].mxu0 %vm188_vm2, %v3088_v7  ;;  %3470 = vmatmul.mubr.msk.bf16.vlgmr.msra.gmra.mrb[72].mxu1 %vm188_vm2, %v3097_v60 }
  0xac   : > { %3462 = vmatpush3.bf16.msra.mxu0 %v2225_v8  ;;  %3463 = vmatprep.mubr.msk.bf16.mxu0 %vm3666_vm1, %v3665_v2  ;;  %p3604_p13 = pneg %p3603_p12 }
  0xad   : > { %3473 = vmatprep.subr.bf16.mxu0 %v3665_v2  ;;  %3480 = vmatpush3.bf16.msra.mxu1 %v2382_v9 }
  0xae   : > { %3481 = vmatprep.mubr.msk.bf16.mxu1 %vm3666_vm1, %v3665_v2  ;;  %3491 = vmatprep.subr.bf16.mxu1 %v3665_v2  ;;  %p3611_p3 = pnand %p3610_p2, %p3604_p13 }
  0xb3   : > { %3464 = vmatmul.mubr.msk.bf16.vlgmr.msra.gmra.mrb[72].mxu0 %vm188_vm2, %v2220_v16  ;;  %3482 = vmatmul.mubr.msk.bf16.vlgmr.msra.gmra.mrb[76].mxu1 %vm188_vm2, %v2377_v17 }
  0xb4   : > { %3474 = vmatpush3.bf16.msra.mxu0 %v2320_v20  ;;  %3475 = vmatprep.mubr.msk.bf16.mxu0 %vm3666_vm1, %v3665_v2 }
  0xb5   : > { %3485 = vmatprep.subr.bf16.mxu0 %v3665_v2  ;;  %3492 = vmatpush3.bf16.msra.mxu1 %v2494_v21 }
  0xb6   : > { %3493 = vmatprep.mubr.msk.bf16.mxu1 %vm3666_vm1, %v3665_v2  ;;  %3503 = vmatprep.subr.bf16.mxu1 %v3665_v2 }
  0xbb   : > { %3476 = vmatmul.mubr.msk.bf16.vlgmr.msra.gmra.mrb[76].mxu0 %vm188_vm2, %v3103_v27  ;;  %3494 = vmatmul.mubr.msk.bf16.vlgmr.msra.gmra.mrb[80].mxu1 %vm188_vm2, %v2489_v25 }
  0xbc   : > { %3486 = vmatpush3.bf16.msra.mxu0 %v2432_v30  ;;  %3487 = vmatprep.mubr.msk.bf16.mxu0 %vm3666_vm1, %v3665_v2 }
  0xbd   : > { %3497 = vmatprep.subr.bf16.mxu0 %v3665_v2  ;;  %3504 = vmatpush3.bf16.msra.mxu1 %v2608_v31 }
  0xbe   : > { %3505 = vmatprep.mubr.msk.bf16.mxu1 %vm3666_vm1, %v3665_v2  ;;  %3515 = vmatprep.subr.bf16.mxu1 %v3665_v2 }
  0xc3   : > { %3488 = vmatmul.mubr.msk.bf16.vlgmr.msra.gmra.mrb[80].mxu0 %vm188_vm2, %v3111_v38  ;;  %3506 = vmatmul.mubr.msk.bf16.vlgmr.msra.gmra.mrb[84].mxu1 %vm188_vm2, %v3120_v28 }
  0xc4   : > { %3498 = vmatpush3.bf16.msra.mxu0 %v2562_v39  ;;  %3499 = vmatprep.mubr.msk.bf16.mxu0 %vm3666_vm1, %v3665_v2 }
  0xc5   : > { %3509 = vmatprep.subr.bf16.mxu0 %v3665_v2  ;;  %3516 = vmatpush3.bf16.msra.mxu1 %v2719_v40 }
  0xc6   : > { %3517 = vmatprep.mubr.msk.bf16.mxu1 %vm3666_vm1, %v3665_v2  ;;  %3527 = vmatprep.subr.bf16.mxu1 %v3665_v2 }
  0xcb   : > { %3500 = vmatmul.mubr.msk.bf16.vlgmr.msra.gmra.mrb[84].mxu0 %vm188_vm2, %v2557_v47  ;;  %3518 = vmatmul.mubr.msk.bf16.vlgmr.msra.gmra.mrb[88].mxu1 %vm188_vm2, %v2714_v48 }
  0xcc   : > { %3510 = vmatpush3.bf16.msra.mxu0 %v2657_v51  ;;  %3511 = vmatprep.mubr.msk.bf16.mxu0 %vm3666_vm1, %v3665_v2 }
  0xcd   : > { %3521 = vmatprep.subr.bf16.mxu0 %v3665_v2  ;;  %3528 = vmatpush3.bf16.msra.mxu1 %v2831_v52 }
  0xce   : > { %3529 = vmatprep.mubr.msk.bf16.mxu1 %vm3666_vm1, %v3665_v2 }
  0xd3   : > { %3512 = vmatmul.mubr.msk.bf16.vlgmr.msra.gmra.mrb[88].mxu0 %vm188_vm2, %v3126_v57  ;;  %3530 = vmatmul.mubr.msk.bf16.vlgmr.msra.gmra.mrb[92].mxu1 %vm188_vm2, %v2826_v56 }
  0xd4   : > { %3522 = vmatpush3.bf16.msra.mxu0 %v2769_v58  ;;  %3523 = vmatprep.mubr.msk.bf16.mxu0 %vm3666_vm1, %v3665_v2 }
  0xdb   : > { %3524 = vmatmul.mubr.msk.bf16.vlgmr.msra.gmra.mrb[92].mxu0 %vm188_vm2, %v3134_v59 }
  0xee   : > { %v276_v60 = vpop.f32.mrb[0].mxu1 }
  0xef   : > { %v3255_v61 = vpop.f32.mrb[1].mxu1 }
  0xf0   : > { %v279_v62 = vpop.f32.mrb[2].mxu1 }
  0xf1   : > { %v3256_v63 = vpop.f32.mrb[3].mxu1 }
  0xf6   : > { %v230_v0 = vpop.f32.mrb[0].mxu0  ;;  %v389_v1 = vpop.f32.mrb[4].mxu1 }
  0xf7   : > { %v277_v3 = vadd.f32 %v276_v60, %v230_v0  ;;  %v3249_v4 = vpop.f32.mrb[1].mxu0  ;;  %v3267_v5 = vpop.f32.mrb[5].mxu1 }
  0xf8   : > { %v233_v6 = vpop.f32.mrb[2].mxu0  ;;  %v392_v7 = vpop.f32.mrb[6].mxu1 }
  0xf9   : > { %v3250_v8 = vpop.f32.mrb[3].mxu0  ;;  %v3268_v9 = vpop.f32.mrb[7].mxu1 }
  0xfe   : > { %v326_v10 = vpop.f32.mrb[4].mxu0  ;;  %v503_v11 = vpop.f32.mrb[8].mxu1 }
  0xff   : > { %v332_v2 = vadd.f32 %v326_v10, %v277_v3  ;;  %v3261_v12 = vpop.f32.mrb[5].mxu0  ;;  %v3279_v13 = vpop.f32.mrb[9].mxu1 }
 0x100   : > { %v329_v14 = vpop.f32.mrb[6].mxu0  ;;  %v506_v15 = vpop.f32.mrb[10].mxu1 }
 0x101   : > { %v3262_v16 = vpop.f32.mrb[7].mxu0  ;;  %v395_v17 = vadd.f32 %v389_v1, %v332_v2  ;;  %v3280_v18 = vpop.f32.mrb[11].mxu1 }
 0x106   : > { %v440_v19 = vpop.f32.mrb[8].mxu0  ;;  %v622_v20 = vpop.f32.mrb[12].mxu1 }
 0x107   : > { %v446_v21 = vadd.f32 %v440_v19, %v395_v17  ;;  %v3273_v22 = vpop.f32.mrb[9].mxu0  ;;  %v3291_v23 = vpop.f32.mrb[13].mxu1 }
 0x108   : > { %v443_v25 = vpop.f32.mrb[10].mxu0  ;;  %v625_v26 = vpop.f32.mrb[14].mxu1 }
 0x109   : > { %v509_v27 = vadd.f32 %v503_v11, %v446_v21  ;;  %v3274_v28 = vpop.f32.mrb[11].mxu0  ;;  %v3292_v29 = vpop.f32.mrb[15].mxu1 }
 0x10b   : > { %v516_v30 = vadd.f32 %v4181_v24, %v509_v27 }
 0x10d   : > { %v517_v31 = vmax.f32 %v516_v30, 0.0 }
 0x10e   : > { %v576_v32 = vpop.f32.mrb[12].mxu0  ;;  %v733_v33 = vpop.f32.mrb[16].mxu1 }
 0x10f   : > { %v518_v34 = vpack.c.bf16 %v517_v31, %v517_v31  ;;  %v623_v35 = vadd.f32 %v622_v20, %v576_v32  ;;  %v3285_v36 = vpop.f32.mrb[13].mxu0  ;;  %v3303_v37 = vpop.f32.mrb[17].mxu1 }
 0x110   : > { %v579_v38 = vpop.f32.mrb[14].mxu0  ;;  %v736_v39 = vpop.f32.mrb[18].mxu1 }
 0x111   : > { %519 = vst [vmem:[%s4186_s25] sm:$0xf] %v518_v34  ;;  %v3286_v40 = vpop.f32.mrb[15].mxu0  ;;  %v3304_v41 = vpop.f32.mrb[19].mxu1 }
 0x116   : > { %v671_v42 = vpop.f32.mrb[16].mxu0  ;;  %v845_v43 = vpop.f32.mrb[20].mxu1 }
 0x117   : > { %v677_v44 = vadd.f32 %v671_v42, %v623_v35  ;;  %v3297_v45 = vpop.f32.mrb[17].mxu0  ;;  %v3315_v46 = vpop.f32.mrb[21].mxu1 }
 0x118   : > { %v674_v47 = vpop.f32.mrb[18].mxu0  ;;  %v848_v48 = vpop.f32.mrb[22].mxu1 }
 0x119   : > { %v3298_v49 = vpop.f32.mrb[19].mxu0  ;;  %v739_v50 = vadd.f32 %v733_v33, %v677_v44  ;;  %v3316_v51 = vpop.f32.mrb[23].mxu1 }
 0x11e   : > { %v783_v52 = vpop.f32.mrb[20].mxu0  ;;  %v959_v53 = vpop.f32.mrb[24].mxu1 }
 0x11f   : > { %v789_v54 = vadd.f32 %v783_v52, %v739_v50  ;;  %v3309_v55 = vpop.f32.mrb[21].mxu0  ;;  %v3327_v56 = vpop.f32.mrb[25].mxu1 }
 0x120   : > { %v786_v57 = vpop.f32.mrb[22].mxu0  ;;  %v962_v58 = vpop.f32.mrb[26].mxu1 }
 0x121   : > { %v851_v59 = vadd.f32 %v845_v43, %v789_v54  ;;  %v3310_v60 = vpop.f32.mrb[23].mxu0  ;;  %v3328_v61 = vpop.f32.mrb[27].mxu1 }
 0x123   : > { %v852_v62 = vadd.f32 %v4181_v24, %v851_v59 }
 0x125   : > { %v853_v63 = vmax.f32 %v852_v62, 0.0 }
 0x126   : > { %v913_v0 = vpop.f32.mrb[24].mxu0  ;;  %v1070_v1 = vpop.f32.mrb[28].mxu1 }
 0x127   : > { %v854_v3 = vpack.c.bf16 %v853_v63, %v853_v63  ;;  %v960_v4 = vadd.f32 %v959_v53, %v913_v0  ;;  %v3321_v5 = vpop.f32.mrb[25].mxu0  ;;  %v3339_v6 = vpop.f32.mrb[29].mxu1 }
 0x128   : > { %v916_v7 = vpop.f32.mrb[26].mxu0  ;;  %v1073_v8 = vpop.f32.mrb[30].mxu1 }
 0x129   : > { %3004 = vst [vmem:[%s4186_s25 + $0x4] sm:$0xf] %v854_v3  ;;  %v3322_v9 = vpop.f32.mrb[27].mxu0  ;;  %v3340_v10 = vpop.f32.mrb[31].mxu1 }
 0x12e   : > { %v1008_v11 = vpop.f32.mrb[28].mxu0  ;;  %v1182_v2 = vpop.f32.mrb[32].mxu1 }
 0x12f   : > { %v1014_v12 = vadd.f32 %v1008_v11, %v960_v4  ;;  %v3333_v13 = vpop.f32.mrb[29].mxu0  ;;  %v3351_v14 = vpop.f32.mrb[33].mxu1 }
 0x130   : > { %v1011_v15 = vpop.f32.mrb[30].mxu0  ;;  %v1185_v16 = vpop.f32.mrb[34].mxu1 }
 0x131   : > { %v3334_v17 = vpop.f32.mrb[31].mxu0  ;;  %v1076_v18 = vadd.f32 %v1070_v1, %v1014_v12  ;;  %v3352_v19 = vpop.f32.mrb[35].mxu1 }
 0x136   : > { %v1120_v20 = vpop.f32.mrb[32].mxu0  ;;  %v1296_v21 = vpop.f32.mrb[36].mxu1 }
 0x137   : > { %v1126_v22 = vadd.f32 %v1120_v20, %v1076_v18  ;;  %v3345_v23 = vpop.f32.mrb[33].mxu0  ;;  %v3363_v25 = vpop.f32.mrb[37].mxu1 }
 0x138   : > { %v1123_v26 = vpop.f32.mrb[34].mxu0  ;;  %v1299_v27 = vpop.f32.mrb[38].mxu1 }
 0x139   : > { %v1188_v28 = vadd.f32 %v1182_v2, %v1126_v22  ;;  %v3346_v29 = vpop.f32.mrb[35].mxu0  ;;  %v3364_v30 = vpop.f32.mrb[39].mxu1 }
 0x13b   : > { %v1189_v31 = vadd.f32 %v4181_v24, %v1188_v28 }
 0x13d   : > { %v1190_v32 = vmax.f32 %v1189_v31, 0.0 }
 0x13e   : > { %v1250_v33 = vpop.f32.mrb[36].mxu0  ;;  %v1407_v34 = vpop.f32.mrb[40].mxu1 }
 0x13f   : > { %v1191_v35 = vpack.c.bf16 %v1190_v32, %v1190_v32  ;;  %v1297_v36 = vadd.f32 %v1296_v21, %v1250_v33  ;;  %v3357_v37 = vpop.f32.mrb[37].mxu0  ;;  %v3375_v38 = vpop.f32.mrb[41].mxu1 }
 0x140   : > { %v1253_v39 = vpop.f32.mrb[38].mxu0  ;;  %v1410_v40 = vpop.f32.mrb[42].mxu1 }
 0x141   : > { %3027 = vst [vmem:[%s4186_s25 + $0x8] sm:$0xf] %v1191_v35  ;;  %v3358_v41 = vpop.f32.mrb[39].mxu0  ;;  %v3376_v42 = vpop.f32.mrb[43].mxu1 }
 0x146   : > { %v1345_v43 = vpop.f32.mrb[40].mxu0  ;;  %v1519_v44 = vpop.f32.mrb[44].mxu1 }
 0x147   : > { %v1351_v45 = vadd.f32 %v1345_v43, %v1297_v36  ;;  %v3369_v46 = vpop.f32.mrb[41].mxu0  ;;  %v3387_v47 = vpop.f32.mrb[45].mxu1 }
 0x148   : > { %v1348_v48 = vpop.f32.mrb[42].mxu0  ;;  %v1522_v49 = vpop.f32.mrb[46].mxu1 }
 0x149   : > { %v3370_v50 = vpop.f32.mrb[43].mxu0  ;;  %v1413_v51 = vadd.f32 %v1407_v34, %v1351_v45  ;;  %v3388_v52 = vpop.f32.mrb[47].mxu1 }
 0x14e   : > { %v1457_v53 = vpop.f32.mrb[44].mxu0  ;;  %v1633_v54 = vpop.f32.mrb[48].mxu1 }
 0x14f   : > { %v1463_v55 = vadd.f32 %v1457_v53, %v1413_v51  ;;  %v3381_v56 = vpop.f32.mrb[45].mxu0  ;;  %v3399_v57 = vpop.f32.mrb[49].mxu1 }
 0x150   : > { %v1460_v58 = vpop.f32.mrb[46].mxu0  ;;  %v1636_v59 = vpop.f32.mrb[50].mxu1 }
 0x151   : > { %v1525_v60 = vadd.f32 %v1519_v44, %v1463_v55  ;;  %v3382_v61 = vpop.f32.mrb[47].mxu0  ;;  %v3400_v62 = vpop.f32.mrb[51].mxu1 }
 0x153   : > { %v1526_v63 = vadd.f32 %v4181_v24, %v1525_v60 }
 0x155   : > { %v1527_v0 = vmax.f32 %v1526_v63, 0.0 }
 0x156   : > { %v1587_v1 = vpop.f32.mrb[48].mxu0  ;;  %v1744_v3 = vpop.f32.mrb[52].mxu1 }
 0x157   : > { %v1528_v4 = vpack.c.bf16 %v1527_v0, %v1527_v0  ;;  %v1634_v5 = vadd.f32 %v1633_v54, %v1587_v1  ;;  %v3393_v6 = vpop.f32.mrb[49].mxu0  ;;  %v3411_v7 = vpop.f32.mrb[53].mxu1 }
 0x158   : > { %v1590_v8 = vpop.f32.mrb[50].mxu0  ;;  %v1747_v9 = vpop.f32.mrb[54].mxu1 }
 0x159   : > { %3050 = vst [vmem:[%s4186_s25 + $0xc] sm:$0xf] %v1528_v4  ;;  %v3394_v10 = vpop.f32.mrb[51].mxu0  ;;  %v3412_v11 = vpop.f32.mrb[55].mxu1 }
 0x15e   : > { %v1682_v2 = vpop.f32.mrb[52].mxu0  ;;  %v1856_v12 = vpop.f32.mrb[56].mxu1 }
 0x15f   : > { %v1688_v13 = vadd.f32 %v1682_v2, %v1634_v5  ;;  %v3405_v14 = vpop.f32.mrb[53].mxu0  ;;  %v3423_v15 = vpop.f32.mrb[57].mxu1 }
 0x160   : > { %v1685_v16 = vpop.f32.mrb[54].mxu0  ;;  %v1859_v17 = vpop.f32.mrb[58].mxu1 }
 0x161   : > { %v3406_v18 = vpop.f32.mrb[55].mxu0  ;;  %v1750_v19 = vadd.f32 %v1744_v3, %v1688_v13  ;;  %v3424_v20 = vpop.f32.mrb[59].mxu1 }
 0x166   : > { %v1794_v21 = vpop.f32.mrb[56].mxu0  ;;  %v1970_v22 = vpop.f32.mrb[60].mxu1 }
 0x167   : > { %v1800_v23 = vadd.f32 %v1794_v21, %v1750_v19  ;;  %v3417_v25 = vpop.f32.mrb[57].mxu0  ;;  %v3435_v26 = vpop.f32.mrb[61].mxu1 }
 0x168   : > { %v1797_v27 = vpop.f32.mrb[58].mxu0  ;;  %v1973_v28 = vpop.f32.mrb[62].mxu1 }
 0x169   : > { %v1862_v29 = vadd.f32 %v1856_v12, %v1800_v23  ;;  %v3418_v30 = vpop.f32.mrb[59].mxu0  ;;  %v3436_v31 = vpop.f32.mrb[63].mxu1 }
 0x16b   : > { %v1863_v32 = vadd.f32 %v4181_v24, %v1862_v29 }
 0x16d   : > { %v1864_v33 = vmax.f32 %v1863_v32, 0.0 }
 0x16e   : > { %v1924_v34 = vpop.f32.mrb[60].mxu0  ;;  %v2081_v35 = vpop.f32.mrb[64].mxu1 }
 0x16f   : > { %v1865_v36 = vpack.c.bf16 %v1864_v33, %v1864_v33  ;;  %v1971_v37 = vadd.f32 %v1970_v22, %v1924_v34  ;;  %v3429_v38 = vpop.f32.mrb[61].mxu0  ;;  %v3447_v39 = vpop.f32.mrb[65].mxu1 }
 0x170   : > { %v1927_v40 = vpop.f32.mrb[62].mxu0  ;;  %v2084_v41 = vpop.f32.mrb[66].mxu1 }
 0x171   : > { %3073 = vst [vmem:[%s4186_s25 + $0x10] sm:$0xf] %v1865_v36  ;;  %v3430_v42 = vpop.f32.mrb[63].mxu0  ;;  %v3448_v43 = vpop.f32.mrb[67].mxu1 }
 0x176   : > { %v2019_v44 = vpop.f32.mrb[64].mxu0  ;;  %v2193_v45 = vpop.f32.mrb[68].mxu1 }
 0x177   : > { %v2025_v46 = vadd.f32 %v2019_v44, %v1971_v37  ;;  %v3441_v47 = vpop.f32.mrb[65].mxu0  ;;  %v3459_v48 = vpop.f32.mrb[69].mxu1 }
 0x178   : > { %v2022_v49 = vpop.f32.mrb[66].mxu0  ;;  %v2196_v50 = vpop.f32.mrb[70].mxu1 }
 0x179   : > { %v3442_v51 = vpop.f32.mrb[67].mxu0  ;;  %v2087_v52 = vadd.f32 %v2081_v35, %v2025_v46  ;;  %v3460_v53 = vpop.f32.mrb[71].mxu1 }
 0x17e   : > { %v2131_v54 = vpop.f32.mrb[68].mxu0  ;;  %v2307_v55 = vpop.f32.mrb[72].mxu1 }
 0x17f   : > { %v2137_v56 = vadd.f32 %v2131_v54, %v2087_v52  ;;  %v3453_v57 = vpop.f32.mrb[69].mxu0  ;;  %v3471_v58 = vpop.f32.mrb[73].mxu1 }
 0x180   : > { %v2134_v59 = vpop.f32.mrb[70].mxu0  ;;  %v2310_v60 = vpop.f32.mrb[74].mxu1 }
 0x181   : > { %v2199_v61 = vadd.f32 %v2193_v45, %v2137_v56  ;;  %v3454_v62 = vpop.f32.mrb[71].mxu0  ;;  %v3472_v63 = vpop.f32.mrb[75].mxu1 }
 0x183   : > { %v2200_v0 = vadd.f32 %v4181_v24, %v2199_v61 }
 0x185   : > { %v2201_v1 = vmax.f32 %v2200_v0, 0.0 }
 0x186   : > { %v2261_v3 = vpop.f32.mrb[72].mxu0  ;;  %v2418_v4 = vpop.f32.mrb[76].mxu1 }
 0x187   : > { %v2202_v5 = vpack.c.bf16 %v2201_v1, %v2201_v1  ;;  %v2308_v6 = vadd.f32 %v2307_v55, %v2261_v3  ;;  %v3465_v7 = vpop.f32.mrb[73].mxu0  ;;  %v3483_v8 = vpop.f32.mrb[77].mxu1 }
 0x188   : > { %v2264_v9 = vpop.f32.mrb[74].mxu0  ;;  %v2421_v10 = vpop.f32.mrb[78].mxu1 }
 0x189   : > { %3096 = vst [vmem:[%s4186_s25 + $0x14] sm:$0xf] %v2202_v5  ;;  %v3466_v11 = vpop.f32.mrb[75].mxu0  ;;  %v3484_v2 = vpop.f32.mrb[79].mxu1 }
 0x18e   : > { %v2356_v12 = vpop.f32.mrb[76].mxu0  ;;  %v2530_v13 = vpop.f32.mrb[80].mxu1 }
 0x18f   : > { %v2362_v14 = vadd.f32 %v2356_v12, %v2308_v6  ;;  %v3477_v15 = vpop.f32.mrb[77].mxu0  ;;  %v3495_v16 = vpop.f32.mrb[81].mxu1 }
 0x190   : > { %v2359_v17 = vpop.f32.mrb[78].mxu0  ;;  %v2533_v18 = vpop.f32.mrb[82].mxu1 }
 0x191   : > { %v3478_v19 = vpop.f32.mrb[79].mxu0  ;;  %v2424_v20 = vadd.f32 %v2418_v4, %v2362_v14  ;;  %v3496_v21 = vpop.f32.mrb[83].mxu1 }
 0x196   : > { %v2468_v22 = vpop.f32.mrb[80].mxu0  ;;  %v2644_v23 = vpop.f32.mrb[84].mxu1 }
 0x197   : > { %v2474_v25 = vadd.f32 %v2468_v22, %v2424_v20  ;;  %v3489_v26 = vpop.f32.mrb[81].mxu0  ;;  %v3507_v27 = vpop.f32.mrb[85].mxu1 }
 0x198   : > { %v2471_v28 = vpop.f32.mrb[82].mxu0  ;;  %v2647_v29 = vpop.f32.mrb[86].mxu1 }
 0x199   : > { %v2536_v30 = vadd.f32 %v2530_v13, %v2474_v25  ;;  %v3490_v31 = vpop.f32.mrb[83].mxu0  ;;  %v3508_v32 = vpop.f32.mrb[87].mxu1 }
 0x19b   : > { %v2537_v33 = vadd.f32 %v4181_v24, %v2536_v30 }
 0x19d   : > { %v2538_v34 = vmax.f32 %v2537_v33, 0.0 }
 0x19e   : > { %v2598_v35 = vpop.f32.mrb[84].mxu0  ;;  %v2755_v36 = vpop.f32.mrb[88].mxu1 }
 0x19f   : > { %v2539_v37 = vpack.c.bf16 %v2538_v34, %v2538_v34  ;;  %v2645_v38 = vadd.f32 %v2644_v23, %v2598_v35  ;;  %v3501_v39 = vpop.f32.mrb[85].mxu0  ;;  %v3519_v40 = vpop.f32.mrb[89].mxu1 }
 0x1a0   : > { %v2601_v41 = vpop.f32.mrb[86].mxu0  ;;  %v2758_v42 = vpop.f32.mrb[90].mxu1 }
 0x1a1   : > { %3119 = vst [vmem:[%s4186_s25 + $0x18] sm:$0xf] %v2539_v37  ;;  %v3502_v43 = vpop.f32.mrb[87].mxu0  ;;  %v3520_v44 = vpop.f32.mrb[91].mxu1 }
 0x1a6   : > { %v2693_v45 = vpop.f32.mrb[88].mxu0  ;;  %v2867_v46 = vpop.f32.mrb[92].mxu1 }
 0x1a7   : > { %v2699_v47 = vadd.f32 %v2693_v45, %v2645_v38  ;;  %v3513_v48 = vpop.f32.mrb[89].mxu0  ;;  %v3531_v49 = vpop.f32.mrb[93].mxu1 }
 0x1a8   : > { %v2696_v50 = vpop.f32.mrb[90].mxu0  ;;  %v2870_v51 = vpop.f32.mrb[94].mxu1 }
 0x1a9   : > { %v3514_v52 = vpop.f32.mrb[91].mxu0  ;;  %v2761_v53 = vadd.f32 %v2755_v36, %v2699_v47  ;;  %v3532_v54 = vpop.f32.mrb[95].mxu1 }
 0x1ae   : > { %v2805_v55 = vpop.f32.mrb[92].mxu0 }
 0x1af   : > { %v2811_v56 = vadd.f32 %v2805_v55, %v2761_v53  ;;  %v3525_v57 = vpop.f32.mrb[93].mxu0 }
 0x1b0   : > { %v2808_v58 = vpop.f32.mrb[94].mxu0 }
 0x1b1   : > { %v2873_v59 = vadd.f32 %v2867_v46, %v2811_v56  ;;  %v3526_v60 = vpop.f32.mrb[95].mxu0 }
 0x1b3   : > { %v2874_v61 = vadd.f32 %v4181_v24, %v2873_v59 }
 0x1b5   : > { %v2875_v62 = vmax.f32 %v2874_v61, 0.0 }
 0x1b7   : > { %v2876_v63 = vpack.c.bf16 %v2875_v62, %v2875_v62 }
 0x1b9   : > { %3142 = vst [vmem:[%s4186_s25 + $0x1c] sm:$0xf] %v2876_v63 }
 0x1ba   : > { %3614 = shalt.err (!%p3611_p3)
}
 0x1bb   : > { %s3615_s9 = scalar_lea.hbm %s4207_s30, 512  ;;  %s3619_s17 = scalar_lea.hbm %s4258_s3, 1024 }
 0x1bc   : > { %p3616_p4 = scmp.ne.s32.totalorder %s4207_s30, %s3615_s9  ;;  %p3620_p9 = scmp.lt.u32.totalorder %s4207_s30, %s4258_s3 }
 0x1bd   : > { %p3621_p10 = scmp.lt.u32.totalorder %s3619_s17, %s3615_s9  ;;  %p3623_p12 = scmp.lt.u32.totalorder %s3615_s9, %s4207_s30 }
 0x1be   : > { %p3617_p7 = pnand %p3616_p4, %p3728_p5 }
 0x1bf   : > { %p3622_p11 = por %p3621_p10, %p3620_p9 }
 0x1c0   : > { %p3618_p8 = pneg %p3617_p7 }
 0x1c1   : > { %p3624_p13 = por %p3623_p12, %p3622_p11 }
 0x1c3   : > { %p3625_p0 = pnand %p3624_p13, %p3618_p8 }
 0x1c5   : > { %3628 = shalt.err (!%p3625_p0)
}
 0x1c6   : > { %s3668_s20 = smov 64   ;;  %s3669_s24 = smov 4  }
 0x1c7   : > { %3534 = dma.vmem_to_hbm [thread:$0]  (%p3728_p5), %s4209_s27, 512, %s4207_s30, %s4214_s4, %s3668_s20, %s3668_s20, %s3669_s24  }
 0x1c8 PF: > { %p3540_p1 = scmp.ge.s32.totalorder %s3663_s15, 2  ;;  %s2908_s25 = sand.u32 1, %s3651_s12  }
 0x1c9   : > { %s2909_s26 = scalar_lea.sflag [#allocation3], %s2908_s25 }
 0x1ca   : > { %p3537_p2 = pnand %p3540_p1, %p3732_p6 }
 0x1cc   : > { %3646 = dma.done.wait (!%p3537_p2), %s2909_s26, 512  }
 0x1cd   : > { %3648 = vsyncadd (!%p3537_p2), %s2909_s26, 4294966784  ;;  %p13_p3 = scmp.ge.s32.totalorder %s3715_s18, 4   ;;  %s4261_s12 = smov %s3655_s13 }
 0x1ce   : > { %s4262_s13 = smov %s3659_s14  ;;  %s4263_s14 = smov %s3726_s21 }
 0x1cf   : > { %s4264_s15 = smov %s3715_s18  ;;  %15 = sbr.rel (!%p13_p3) target bundleno = 3 (0x3), region = 95 }
 0x1d6   :  { %2914 = vsyncpa [#allocation3], 1 }
 0x1d7   :  { %2916 = vsyncpa [#allocation3 + $0x1], 1 }

</bundles_post_ra>
